<compile_context>
chip_gen: v7x
topology: tpu7x:2x2x1
jax: 0.10.0
libtpu: 0.0.40
codegen_flags: <defaults>
</compile_context>

<pallas_src>
import math

import jax
import jax.numpy as jnp
from jax import lax
from jax.experimental import pallas as pl
from jax.experimental.pallas import tpu as pltpu


# ----------------------------------------------------------------------------
# Kernel A: row-blocked matmul   x.reshape(-1, c_in) @ weight
# ----------------------------------------------------------------------------
def _row_matmul_kernel(x_ref, w_ref, o_ref):
    o_ref[...] = jnp.dot(x_ref[...], w_ref[...], preferred_element_type=jnp.float32)


def pallas_row_matmul(x2d, w):
    n, c = x2d.shape
    m = w.shape[1]
    rb = n                                           # fall back: whole thing (== full dim)
    for cand in (4096, 2048, 1024, 512, 256, 128, 64, 32, 16, 8):
        if cand <= n and n % cand == 0:              # rb | n and rb % 8 == 0
            rb = cand
            break
    return pl.pallas_call(
        _row_matmul_kernel,
        out_shape=jax.ShapeDtypeStruct((n, m), jnp.float32),
        grid_spec=pltpu.PrefetchScalarGridSpec(
            num_scalar_prefetch=0,
            grid=(n // rb,),
            in_specs=[
                pl.BlockSpec((rb, c), lambda i: (i, 0)),
                pl.BlockSpec((c, m), lambda i: (0, 0)),
            ],
            out_specs=pl.BlockSpec((rb, m), lambda i: (i, 0)),
        ),
        compiler_params=pltpu.CompilerParams(dimension_semantics=("parallel",)),
    )(x2d, w)


# ----------------------------------------------------------------------------
# Kernel B: fused q|k projection + per-t softmax attention + graph aggregation
#           + final (reshape-quirk) bias, one (b, T-slab) per grid step.
# ----------------------------------------------------------------------------
def _choose_time_block(T, V, C, c_out, vmem_budget_bytes=4 << 20):
    """Time steps handled per program.

    Prefer the whole T axis (amortizes the ~0.35us/step grid overhead, keeps the
    output slab lane-dense).  Shrink only if the per-program blocks would not fit
    a conservative VMEM budget (headroom for v7x's 64 MiB VMEM, double-buffered);
    a smaller TB must divide T and keep TB*V a multiple of 128 (BlockSpec rule).
    """
    def footprint(tb):
        lanes = tb * V
        return 2 * 4 * lanes * (C + 3 * c_out)       # f32 x / x_first / bias / out, 2x buffered

    if footprint(T) <= vmem_budget_bytes:
        return T
    for tb in range(T - 1, 0, -1):
        if T % tb == 0 and (tb * V) % 128 == 0 and footprint(tb) <= vmem_budget_bytes:
            return tb
    return T


def make_fused_attention(B, T, V, C, c_out, tb, approx_softmax):
    TV = tb * V

    def kernel(x_ref, wqk_ref, bqk_ref, xf_ref, bp_ref, o_ref):
        # x_ref  : (C, TB*V)      x[b, :, t-slab]  (channels x flattened (t, v))
        # wqk_ref: (2C, C)        [Wq / sqrt(d_k) ; Wk]
        # bqk_ref: (2C, 1)        [bq / sqrt(d_k) ; bk]
        # xf_ref : (c_out, TB*V)  x_first_mul[b] slab (torch flat layout)
        # bp_ref : (c_out, TB*V)  final-bias pattern (torch reshape quirk)
        # o_ref  : (c_out, TB*V)  lane-dense output slab
        # Single fused q|k projection for the whole slab; bias broadcast hoisted
        # out of the per-t loop.
        qk = jnp.dot(wqk_ref[...], x_ref[...],
                     preferred_element_type=jnp.float32) + bqk_ref[...]   # (2C, TB*V)
        xf = xf_ref[...]
        bp = bp_ref[...]
        for t in range(tb):                       # static unroll over the (small) slab
            lo = t * V
            q_t = qk[:C, lo:lo + V]               # (C, V) == q[b, t].T, pre-scaled
            k_t = qk[C:, lo:lo + V]               # (C, V) == k[b, t].T
            # Head-summed scores == full q k^T (heads partition the feature dim);
            # contract dim 0 of both operands so no k transpose is materialized.
            s = lax.dot_general(q_t, k_t, (((0,), (0,)), ((), ())),
                                preferred_element_type=jnp.float32)       # (V, V)
            s = s - jnp.max(s, axis=-1, keepdims=True)
            e = jnp.exp(s)
            p = e * pl.reciprocal(jnp.sum(e, axis=-1, keepdims=True),
                                  approx=approx_softmax)
            # TODO(synk): train-mode dropout on p_attn / output not reproduced (eval identity).
            o_ref[:, lo:lo + V] = (
                jnp.dot(xf[:, lo:lo + V], p, preferred_element_type=jnp.float32)
                + bp[:, lo:lo + V])

    grid_spec = pltpu.PrefetchScalarGridSpec(
        num_scalar_prefetch=0,
        grid=(B, T // tb),
        in_specs=[
            pl.BlockSpec((None, C, TV), lambda b, s: (b, 0, s)),          # x (B, C, T*V)
            pl.BlockSpec((2 * C, C), lambda b, s: (0, 0)),                # Wq|Wk
            pl.BlockSpec((2 * C, 1), lambda b, s: (0, 0)),                # bq|bk
            pl.BlockSpec((None, c_out, TV), lambda b, s: (b, 0, s)),      # x_first
            pl.BlockSpec((c_out, TV), lambda b, s: (0, s)),               # bias pattern
        ],
        out_specs=pl.BlockSpec((None, c_out, TV), lambda b, s: (b, 0, s)),
    )
    return pl.pallas_call(
        kernel,
        out_shape=jax.ShapeDtypeStruct((B, c_out, T * V), jnp.float32),
        grid_spec=grid_spec,
        compiler_params=pltpu.CompilerParams(
            dimension_semantics=("parallel", "parallel")),
    )


# ----------------------------------------------------------------------------
# Forward wrapper (only free reshapes / tiny weight prep outside the kernels)
# ----------------------------------------------------------------------------
def smhsa_forward(x, params, *, approx_softmax=True):
    B, c_in, T, V = x.shape
    C = c_in
    c_out = params["weight"].shape[1]
    d_model = params["wq"].shape[0]                  # == c_in == 2 * c_out
    d_k = d_model // 4                               # h = 4 heads
    inv_sqrt_dk = 1.0 / math.sqrt(d_k)

    # Kernel A: faithful to torch.mm(x.reshape(-1, c_in), weight).
    n_rows = (B * C * T * V) // C
    x_rows = x.reshape(n_rows, C)                                        # free reinterpret
    x_first = pallas_row_matmul(x_rows, params["weight"])                # (n_rows, c_out)
    # Its flat data is exactly torch's (B, c_out, T, V); view it lane-dense.
    x_first = x_first.reshape(B, c_out, T * V)                           # free reinterpret

    # Fused q|k weights; fold the 1/sqrt(d_k) score scaling into Wq / bq.
    wqk = jnp.concatenate([params["wq"] * inv_sqrt_dk, params["wk"]], axis=0)   # (2C, C)
    bqk = jnp.concatenate([params["bq"] * inv_sqrt_dk, params["bk"]])[:, None]  # (2C, 1)

    # Final bias as torch applies it: `.reshape(-1, c_out) + bias` on the
    # (B, c_out, T, V) tensor => bias index == flat_index % c_out (batch-independent).
    tv = jnp.arange(T * V)[None, :]
    j = jnp.arange(c_out)[:, None]
    bias_pattern = params["bias"][(j * (T * V) + tv) % c_out]            # (c_out, T*V)

    x_ctv = x.reshape(B, C, T * V)                                       # free reinterpret
    tb = _choose_time_block(T, V, C, c_out)
    attn = make_fused_attention(B, T, V, C, c_out, tb, approx_softmax)
    out = attn(x_ctv, wqk, bqk, x_first, bias_pattern)                   # (B, c_out, T*V)
    return out.reshape(-1, c_out)                                        # free reinterpret


smhsa_forward_jit = jax.jit(smhsa_forward, static_argnames=("approx_softmax",))


# ----------------------------------------------------------------------------
# Pure-JAX reference (mirrors the PyTorch forward exactly) for validation
# ----------------------------------------------------------------------------
def smhsa_reference(x, params):
    B, c_in, T, V = x.shape
    c_out = params["weight"].shape[1]
    h = 4
    d_k = c_in // h
    xp = jnp.transpose(x, (0, 2, 3, 1))
    q = xp @ params["wq"].T + params["bq"]
    k = xp @ params["wk"].T + params["bk"]
    qh = q.reshape(B, T, V, h, d_k).transpose(0, 1, 3, 2, 4)
    kh = k.reshape(B, T, V, h, d_k).transpose(0, 1, 3, 2, 4)
    scores = jnp.einsum("bthmd,bthnd->bthmn", qh, kh)
    scores = scores.sum(axis=2) / math.sqrt(d_k)                  # en_mult_g=True
    p = jax.nn.softmax(scores, axis=-1)
    xfm = (x.reshape(-1, c_in) @ params["weight"]).reshape(B, c_out, T, V)
    out = jnp.einsum("bjtm,btmn->bjtn", xfm, p).reshape(-1, c_out)
    return out + params["bias"]


# ----------------------------------------------------------------------------
# Deterministic parameter init (shapes per SMHSA / MultiHead __init__)
# ----------------------------------------------------------------------------
def init_params(key, c_in, c_out):
    d_model = 2 * c_out                       # == c_in
    k1, k2, k3, k4, k5, k6 = jax.random.split(key, 6)
    a = math.sqrt(6.0 / (c_in + c_out))       # xavier_uniform style
    bw = 1.0 / math.sqrt(c_out)
    bl = 1.0 / math.sqrt(d_model)
    return {
        "weight": jax.random.uniform(k1, (c_in, c_out), jnp.float32, -a, a),
        "bias":   jax.random.uniform(k2, (c_out,), jnp.float32, -bw, bw),
        "wq":     jax.random.uniform(k3, (d_model, d_model), jnp.float32, -bl, bl),
        "bq":     jax.random.uniform(k4, (d_model,), jnp.float32, -bl, bl),
        "wk":     jax.random.uniform(k5, (d_model, d_model), jnp.float32, -bl, bl),
        "bk":     jax.random.uniform(k6, (d_model,), jnp.float32, -bl, bl),
    }


if __name__ == "__main__":
    # c_in == 2*c_out (required by the module) ; d_model % 4 == 0 ; T*V == 128.
    B, c_in, c_out, T, V = 2, 8, 4, 8, 16
    key = jax.random.PRNGKey(0)
    kx, kp = jax.random.split(key)
    x = jax.random.normal(kx, (B, c_in, T, V), dtype=jnp.float32)
    params = init_params(kp, c_in, c_out)

    ref = smhsa_reference(x, params)

    # Exact-reciprocal path: tight check against the pure-JAX reference.
    out_exact = jax.block_until_ready(smhsa_forward_jit(x, params, approx_softmax=False))
    assert out_exact.shape == (B * T * V, c_out), out_exact.shape
    err = float(jnp.max(jnp.abs(out_exact - ref)))
    assert jnp.allclose(out_exact, ref, atol=1e-4, rtol=1e-4), err

    # Default perf path: EUP approximate reciprocal in the softmax (per review);
    # slightly looser tolerance to cover the approximation.
    out = jax.block_until_ready(smhsa_forward_jit(x, params, approx_softmax=True))
    err = float(jnp.max(jnp.abs(out - ref)))
    assert jnp.allclose(out, ref, atol=1e-2, rtol=1e-2), err

    print("KERNEL_OK")
</pallas_src>

<mosaic_0001>
module attributes {stable_mosaic.version = 11 : i64} {
  func.func @_row_matmul_kernel(%arg0: i32, %arg1: memref<256x8xf32, #tpu.memory_space<vmem>>, %arg2: memref<8x4xf32, #tpu.memory_space<vmem>>, %arg3: memref<256x4xf32, #tpu.memory_space<vmem>>) attributes {dimension_semantics = [#tpu.dimension_semantics<parallel>], iteration_bounds = array<i64: 1>, scalar_prefetch = 0 : i64, scratch_operands = 0 : i64, tpu.core_type = #tpu.core_type<tc>, window_params = [{transform_indices = @transform_0, window_bounds = array<i64: 256, 8>}, {pipeline_mode = #tpu.pipeline_mode<synchronous>, transform_indices = @transform_1, window_bounds = array<i64: 8, 4>}, {transform_indices = @transform_2, window_bounds = array<i64: 256, 4>}]} {
    %c0 = arith.constant 0 : index
    %c0_0 = arith.constant 0 : index
    %0 = vector.load %arg1[%c0, %c0_0] : memref<256x8xf32, #tpu.memory_space<vmem>>, vector<256x8xf32>
    %c0_1 = arith.constant 0 : index
    %c0_2 = arith.constant 0 : index
    %1 = vector.load %arg2[%c0_1, %c0_2] : memref<8x4xf32, #tpu.memory_space<vmem>>, vector<8x4xf32>
    %cst = arith.constant dense<0.000000e+00> : vector<256x4xf32>
    %2 = tpu.matmul %0, %1, %cst {dimension_numbers = #tpu.dot_dimension_numbers<[1], [0], [0], [1], [0, 0, 1, 1], [], []>} : vector<256x8xf32>, vector<8x4xf32>, vector<256x4xf32> -> vector<256x4xf32>
    %c0_3 = arith.constant 0 : index
    %c0_4 = arith.constant 0 : index
    %3 = vector.load %arg3[%c0_3, %c0_4] : memref<256x4xf32, #tpu.memory_space<vmem>>, vector<256x4xf32>
    tpu.vector_store %arg3[%c0_3, %c0_4], %2 {strides = array<i32>} : memref<256x4xf32, #tpu.memory_space<vmem>>, vector<256x4xf32>,
    return
  }
  func.func @transform_0(%arg0: i32) -> (i32, i32) {
    %c0_i32 = arith.constant 0 : i32
    %c0_i32_0 = arith.constant 0 : i32
    return %arg0, %c0_i32 : i32, i32
  }
  func.func @transform_1(%arg0: i32) -> (i32, i32) {
    %c0_i32 = arith.constant 0 : i32
    %c0_i32_0 = arith.constant 0 : i32
    %c0_i32_1 = arith.constant 0 : i32
    return %c0_i32, %c0_i32_0 : i32, i32
  }
  func.func @transform_2(%arg0: i32) -> (i32, i32) {
    %c0_i32 = arith.constant 0 : i32
    %c0_i32_0 = arith.constant 0 : i32
    return %arg0, %c0_i32 : i32, i32
  }
}

module attributes {stable_mosaic.version = 11 : i64} {
  func.func @kernel(%arg0: i32, %arg1: i32, %arg2: memref<1x8x128xf32, #tpu.memory_space<vmem>>, %arg3: memref<16x8xf32, #tpu.memory_space<vmem>>, %arg4: memref<16x1xf32, #tpu.memory_space<vmem>>, %arg5: memref<1x4x128xf32, #tpu.memory_space<vmem>>, %arg6: memref<4x128xf32, #tpu.memory_space<vmem>>, %arg7: memref<1x4x128xf32, #tpu.memory_space<vmem>>) attributes {dimension_semantics = [#tpu.dimension_semantics<parallel>, #tpu.dimension_semantics<parallel>], iteration_bounds = array<i64: 2, 1>, scalar_prefetch = 0 : i64, scratch_operands = 0 : i64, tpu.core_type = #tpu.core_type<tc>, window_params = [{transform_indices = @transform_0, window_bounds = array<i64: 1, 8, 128>}, {pipeline_mode = #tpu.pipeline_mode<synchronous>, transform_indices = @transform_1, window_bounds = array<i64: 16, 8>}, {pipeline_mode = #tpu.pipeline_mode<synchronous>, transform_indices = @transform_2, window_bounds = array<i64: 16, 1>}, {transform_indices = @transform_3, window_bounds = array<i64: 1, 4, 128>}, {transform_indices = @transform_4, window_bounds = array<i64: 4, 128>}, {transform_indices = @transform_5, window_bounds = array<i64: 1, 4, 128>}]} {
    %c0 = arith.constant 0 : index
    %c0_0 = arith.constant 0 : index
    %0 = vector.load %arg3[%c0, %c0_0] : memref<16x8xf32, #tpu.memory_space<vmem>>, vector<16x8xf32>
    %c0_1 = arith.constant 0 : index
    %c0_2 = arith.constant 0 : index
    %c0_3 = arith.constant 0 : index
    %1 = vector.load %arg2[%c0_1, %c0_2, %c0_3] : memref<1x8x128xf32, #tpu.memory_space<vmem>>, vector<1x8x128xf32>
    %2 = vector.shape_cast %1 : vector<1x8x128xf32> to vector<8x128xf32>
    %cst = arith.constant dense<0.000000e+00> : vector<16x128xf32>
    %3 = tpu.matmul %0, %2, %cst {dimension_numbers = #tpu.dot_dimension_numbers<[1], [0], [0], [1], [0, 0, 1, 1], [], []>} : vector<16x8xf32>, vector<8x128xf32>, vector<16x128xf32> -> vector<16x128xf32>
    %c0_4 = arith.constant 0 : index
    %c0_5 = arith.constant 0 : index
    %4 = vector.load %arg4[%c0_4, %c0_5] : memref<16x1xf32, #tpu.memory_space<vmem>>, vector<16x1xf32>
    %5 = vector.broadcast %4 : vector<16x1xf32> to vector<16x128xf32>
    %6 = arith.addf %3, %5 : vector<16x128xf32>
    %c0_6 = arith.constant 0 : index
    %c0_7 = arith.constant 0 : index
    %c0_8 = arith.constant 0 : index
    %7 = vector.load %arg5[%c0_6, %c0_7, %c0_8] : memref<1x4x128xf32, #tpu.memory_space<vmem>>, vector<1x4x128xf32>
    %8 = vector.shape_cast %7 : vector<1x4x128xf32> to vector<4x128xf32>
    %c0_9 = arith.constant 0 : index
    %c0_10 = arith.constant 0 : index
    %9 = vector.load %arg6[%c0_9, %c0_10] : memref<4x128xf32, #tpu.memory_space<vmem>>, vector<4x128xf32>
    %10 = vector.extract_strided_slice %6 {offsets = [0, 0], sizes = [8, 16], strides = [1, 1]} : vector<16x128xf32> to vector<8x16xf32>
    %11 = vector.extract_strided_slice %6 {offsets = [8, 0], sizes = [8, 16], strides = [1, 1]} : vector<16x128xf32> to vector<8x16xf32>
    %cst_11 = arith.constant dense<0.000000e+00> : vector<16x16xf32>
    %12 = tpu.matmul %10, %11, %cst_11 {dimension_numbers = #tpu.dot_dimension_numbers<[0], [0], [1], [1], [0, 1, 1, 1], [], []>} : vector<8x16xf32>, vector<8x16xf32>, vector<16x16xf32> -> vector<16x16xf32>
    %cst_12 = arith.constant dense<0xFF800000> : vector<16xf32>
    %13 = vector.multi_reduction <maximumf>, %12, %cst_12 [1] : vector<16x16xf32> to vector<16xf32>
    %14 = vector.shape_cast %13 : vector<16xf32> to vector<16x1xf32>
    %15 = vector.broadcast %14 : vector<16x1xf32> to vector<16x16xf32>
    %16 = arith.subf %12, %15 : vector<16x16xf32>
    %17 = math.exp %16 : vector<16x16xf32>
    %cst_13 = arith.constant dense<0.000000e+00> : vector<16xf32>
    %18 = vector.multi_reduction <add>, %17, %cst_13 [1] : vector<16x16xf32> to vector<16xf32>
    %19 = vector.shape_cast %18 : vector<16xf32> to vector<16x1xf32>
    %20 = tpu.reciprocal %19 : vector<16x1xf32> -> vector<16x1xf32>
    %21 = vector.broadcast %20 : vector<16x1xf32> to vector<16x16xf32>
    %22 = arith.mulf %17, %21 : vector<16x16xf32>
    %23 = vector.extract_strided_slice %8 {offsets = [0, 0], sizes = [4, 16], strides = [1, 1]} : vector<4x128xf32> to vector<4x16xf32>
    %cst_14 = arith.constant dense<0.000000e+00> : vector<4x16xf32>
    %24 = tpu.matmul %23, %22, %cst_14 {dimension_numbers = #tpu.dot_dimension_numbers<[1], [0], [0], [1], [0, 0, 1, 1], [], []>} : vector<4x16xf32>, vector<16x16xf32>, vector<4x16xf32> -> vector<4x16xf32>
    %25 = vector.extract_strided_slice %9 {offsets = [0, 0], sizes = [4, 16], strides = [1, 1]} : vector<4x128xf32> to vector<4x16xf32>
    %26 = arith.addf %24, %25 : vector<4x16xf32>
    %c0_15 = arith.constant 0 : index
    %c0_16 = arith.constant 0 : index
    %c0_17 = arith.constant 0 : index
    %27 = vector.load %arg7[%c0_15, %c0_16, %c0_17] : memref<1x4x128xf32, #tpu.memory_space<vmem>>, vector<1x4x16xf32>
    %28 = vector.shape_cast %27 : vector<1x4x16xf32> to vector<4x16xf32>
    %29 = vector.shape_cast %26 : vector<4x16xf32> to vector<1x4x16xf32>
    tpu.vector_store %arg7[%c0_15, %c0_16, %c0_17], %29 {strides = array<i32>} : memref<1x4x128xf32, #tpu.memory_space<vmem>>, vector<1x4x16xf32>,
    %30 = vector.extract_strided_slice %6 {offsets = [0, 16], sizes = [8, 16], strides = [1, 1]} : vector<16x128xf32> to vector<8x16xf32>
    %31 = vector.extract_strided_slice %6 {offsets = [8, 16], sizes = [8, 16], strides = [1, 1]} : vector<16x128xf32> to vector<8x16xf32>
    %cst_18 = arith.constant dense<0.000000e+00> : vector<16x16xf32>
    %32 = tpu.matmul %30, %31, %cst_18 {dimension_numbers = #tpu.dot_dimension_numbers<[0], [0], [1], [1], [0, 1, 1, 1], [], []>} : vector<8x16xf32>, vector<8x16xf32>, vector<16x16xf32> -> vector<16x16xf32>
    %cst_19 = arith.constant dense<0xFF800000> : vector<16xf32>
    %33 = vector.multi_reduction <maximumf>, %32, %cst_19 [1] : vector<16x16xf32> to vector<16xf32>
    %34 = vector.shape_cast %33 : vector<16xf32> to vector<16x1xf32>
    %35 = vector.broadcast %34 : vector<16x1xf32> to vector<16x16xf32>
    %36 = arith.subf %32, %35 : vector<16x16xf32>
    %37 = math.exp %36 : vector<16x16xf32>
    %cst_20 = arith.constant dense<0.000000e+00> : vector<16xf32>
    %38 = vector.multi_reduction <add>, %37, %cst_20 [1] : vector<16x16xf32> to vector<16xf32>
    %39 = vector.shape_cast %38 : vector<16xf32> to vector<16x1xf32>
    %40 = tpu.reciprocal %39 : vector<16x1xf32> -> vector<16x1xf32>
    %41 = vector.broadcast %40 : vector<16x1xf32> to vector<16x16xf32>
    %42 = arith.mulf %37, %41 : vector<16x16xf32>
    %43 = vector.extract_strided_slice %8 {offsets = [0, 16], sizes = [4, 16], strides = [1, 1]} : vector<4x128xf32> to vector<4x16xf32>
    %cst_21 = arith.constant dense<0.000000e+00> : vector<4x16xf32>
    %44 = tpu.matmul %43, %42, %cst_21 {dimension_numbers = #tpu.dot_dimension_numbers<[1], [0], [0], [1], [0, 0, 1, 1], [], []>} : vector<4x16xf32>, vector<16x16xf32>, vector<4x16xf32> -> vector<4x16xf32>
    %45 = vector.extract_strided_slice %9 {offsets = [0, 16], sizes = [4, 16], strides = [1, 1]} : vector<4x128xf32> to vector<4x16xf32>
    %46 = arith.addf %44, %45 : vector<4x16xf32>
    %c0_22 = arith.constant 0 : index
    %c0_23 = arith.constant 0 : index
    %c16 = arith.constant 16 : index
    %47 = vector.load %arg7[%c0_22, %c0_23, %c16] : memref<1x4x128xf32, #tpu.memory_space<vmem>>, vector<1x4x16xf32>
    %48 = vector.shape_cast %47 : vector<1x4x16xf32> to vector<4x16xf32>
    %49 = vector.shape_cast %46 : vector<4x16xf32> to vector<1x4x16xf32>
    tpu.vector_store %arg7[%c0_22, %c0_23, %c16], %49 {strides = array<i32>} : memref<1x4x128xf32, #tpu.memory_space<vmem>>, vector<1x4x16xf32>,
    %50 = vector.extract_strided_slice %6 {offsets = [0, 32], sizes = [8, 16], strides = [1, 1]} : vector<16x128xf32> to vector<8x16xf32>
    %51 = vector.extract_strided_slice %6 {offsets = [8, 32], sizes = [8, 16], strides = [1, 1]} : vector<16x128xf32> to vector<8x16xf32>
    %cst_24 = arith.constant dense<0.000000e+00> : vector<16x16xf32>
    %52 = tpu.matmul %50, %51, %cst_24 {dimension_numbers = #tpu.dot_dimension_numbers<[0], [0], [1], [1], [0, 1, 1, 1], [], []>} : vector<8x16xf32>, vector<8x16xf32>, vector<16x16xf32> -> vector<16x16xf32>
    %cst_25 = arith.constant dense<0xFF800000> : vector<16xf32>
    %53 = vector.multi_reduction <maximumf>, %52, %cst_25 [1] : vector<16x16xf32> to vector<16xf32>
    %54 = vector.shape_cast %53 : vector<16xf32> to vector<16x1xf32>
    %55 = vector.broadcast %54 : vector<16x1xf32> to vector<16x16xf32>
    %56 = arith.subf %52, %55 : vector<16x16xf32>
    %57 = math.exp %56 : vector<16x16xf32>
    %cst_26 = arith.constant dense<0.000000e+00> : vector<16xf32>
    %58 = vector.multi_reduction <add>, %57, %cst_26 [1] : vector<16x16xf32> to vector<16xf32>
    %59 = vector.shape_cast %58 : vector<16xf32> to vector<16x1xf32>
    %60 = tpu.reciprocal %59 : vector<16x1xf32> -> vector<16x1xf32>
    %61 = vector.broadcast %60 : vector<16x1xf32> to vector<16x16xf32>
    %62 = arith.mulf %57, %61 : vector<16x16xf32>
    %63 = vector.extract_strided_slice %8 {offsets = [0, 32], sizes = [4, 16], strides = [1, 1]} : vector<4x128xf32> to vector<4x16xf32>
    %cst_27 = arith.constant dense<0.000000e+00> : vector<4x16xf32>
    %64 = tpu.matmul %63, %62, %cst_27 {dimension_numbers = #tpu.dot_dimension_numbers<[1], [0], [0], [1], [0, 0, 1, 1], [], []>} : vector<4x16xf32>, vector<16x16xf32>, vector<4x16xf32> -> vector<4x16xf32>
    %65 = vector.extract_strided_slice %9 {offsets = [0, 32], sizes = [4, 16], strides = [1, 1]} : vector<4x128xf32> to vector<4x16xf32>
    %66 = arith.addf %64, %65 : vector<4x16xf32>
    %c0_28 = arith.constant 0 : index
    %c0_29 = arith.constant 0 : index
    %c32 = arith.constant 32 : index
    %67 = vector.load %arg7[%c0_28, %c0_29, %c32] : memref<1x4x128xf32, #tpu.memory_space<vmem>>, vector<1x4x16xf32>
    %68 = vector.shape_cast %67 : vector<1x4x16xf32> to vector<4x16xf32>
    %69 = vector.shape_cast %66 : vector<4x16xf32> to vector<1x4x16xf32>
    tpu.vector_store %arg7[%c0_28, %c0_29, %c32], %69 {strides = array<i32>} : memref<1x4x128xf32, #tpu.memory_space<vmem>>, vector<1x4x16xf32>,
    %70 = vector.extract_strided_slice %6 {offsets = [0, 48], sizes = [8, 16], strides = [1, 1]} : vector<16x128xf32> to vector<8x16xf32>
    %71 = vector.extract_strided_slice %6 {offsets = [8, 48], sizes = [8, 16], strides = [1, 1]} : vector<16x128xf32> to vector<8x16xf32>
    %cst_30 = arith.constant dense<0.000000e+00> : vector<16x16xf32>
    %72 = tpu.matmul %70, %71, %cst_30 {dimension_numbers = #tpu.dot_dimension_numbers<[0], [0], [1], [1], [0, 1, 1, 1], [], []>} : vector<8x16xf32>, vector<8x16xf32>, vector<16x16xf32> -> vector<16x16xf32>
    %cst_31 = arith.constant dense<0xFF800000> : vector<16xf32>
    %73 = vector.multi_reduction <maximumf>, %72, %cst_31 [1] : vector<16x16xf32> to vector<16xf32>
    %74 = vector.shape_cast %73 : vector<16xf32> to vector<16x1xf32>
    %75 = vector.broadcast %74 : vector<16x1xf32> to vector<16x16xf32>
    %76 = arith.subf %72, %75 : vector<16x16xf32>
    %77 = math.exp %76 : vector<16x16xf32>
    %cst_32 = arith.constant dense<0.000000e+00> : vector<16xf32>
    %78 = vector.multi_reduction <add>, %77, %cst_32 [1] : vector<16x16xf32> to vector<16xf32>
    %79 = vector.shape_cast %78 : vector<16xf32> to vector<16x1xf32>
    %80 = tpu.reciprocal %79 : vector<16x1xf32> -> vector<16x1xf32>
    %81 = vector.broadcast %80 : vector<16x1xf32> to vector<16x16xf32>
    %82 = arith.mulf %77, %81 : vector<16x16xf32>
    %83 = vector.extract_strided_slice %8 {offsets = [0, 48], sizes = [4, 16], strides = [1, 1]} : vector<4x128xf32> to vector<4x16xf32>
    %cst_33 = arith.constant dense<0.000000e+00> : vector<4x16xf32>
    %84 = tpu.matmul %83, %82, %cst_33 {dimension_numbers = #tpu.dot_dimension_numbers<[1], [0], [0], [1], [0, 0, 1, 1], [], []>} : vector<4x16xf32>, vector<16x16xf32>, vector<4x16xf32> -> vector<4x16xf32>
    %85 = vector.extract_strided_slice %9 {offsets = [0, 48], sizes = [4, 16], strides = [1, 1]} : vector<4x128xf32> to vector<4x16xf32>
    %86 = arith.addf %84, %85 : vector<4x16xf32>
    %c0_34 = arith.constant 0 : index
    %c0_35 = arith.constant 0 : index
    %c48 = arith.constant 48 : index
    %87 = vector.load %arg7[%c0_34, %c0_35, %c48] : memref<1x4x128xf32, #tpu.memory_space<vmem>>, vector<1x4x16xf32>
    %88 = vector.shape_cast %87 : vector<1x4x16xf32> to vector<4x16xf32>
    %89 = vector.shape_cast %86 : vector<4x16xf32> to vector<1x4x16xf32>
    tpu.vector_store %arg7[%c0_34, %c0_35, %c48], %89 {strides = array<i32>} : memref<1x4x128xf32, #tpu.memory_space<vmem>>, vector<1x4x16xf32>,
    %90 = vector.extract_strided_slice %6 {offsets = [0, 64], sizes = [8, 16], strides = [1, 1]} : vector<16x128xf32> to vector<8x16xf32>
    %91 = vector.extract_strided_slice %6 {offsets = [8, 64], sizes = [8, 16], strides = [1, 1]} : vector<16x128xf32> to vector<8x16xf32>
    %cst_36 = arith.constant dense<0.000000e+00> : vector<16x16xf32>
    %92 = tpu.matmul %90, %91, %cst_36 {dimension_numbers = #tpu.dot_dimension_numbers<[0], [0], [1], [1], [0, 1, 1, 1], [], []>} : vector<8x16xf32>, vector<8x16xf32>, vector<16x16xf32> -> vector<16x16xf32>
    %cst_37 = arith.constant dense<0xFF800000> : vector<16xf32>
    %93 = vector.multi_reduction <maximumf>, %92, %cst_37 [1] : vector<16x16xf32> to vector<16xf32>
    %94 = vector.shape_cast %93 : vector<16xf32> to vector<16x1xf32>
    %95 = vector.broadcast %94 : vector<16x1xf32> to vector<16x16xf32>
    %96 = arith.subf %92, %95 : vector<16x16xf32>
    %97 = math.exp %96 : vector<16x16xf32>
    %cst_38 = arith.constant dense<0.000000e+00> : vector<16xf32>
    %98 = vector.multi_reduction <add>, %97, %cst_38 [1] : vector<16x16xf32> to vector<16xf32>
    %99 = vector.shape_cast %98 : vector<16xf32> to vector<16x1xf32>
    %100 = tpu.reciprocal %99 : vector<16x1xf32> -> vector<16x1xf32>
    %101 = vector.broadcast %100 : vector<16x1xf32> to vector<16x16xf32>
    %102 = arith.mulf %97, %101 : vector<16x16xf32>
    %103 = vector.extract_strided_slice %8 {offsets = [0, 64], sizes = [4, 16], strides = [1, 1]} : vector<4x128xf32> to vector<4x16xf32>
    %cst_39 = arith.constant dense<0.000000e+00> : vector<4x16xf32>
    %104 = tpu.matmul %103, %102, %cst_39 {dimension_numbers = #tpu.dot_dimension_numbers<[1], [0], [0], [1], [0, 0, 1, 1], [], []>} : vector<4x16xf32>, vector<16x16xf32>, vector<4x16xf32> -> vector<4x16xf32>
    %105 = vector.extract_strided_slice %9 {offsets = [0, 64], sizes = [4, 16], strides = [1, 1]} : vector<4x128xf32> to vector<4x16xf32>
    %106 = arith.addf %104, %105 : vector<4x16xf32>
    %c0_40 = arith.constant 0 : index
    %c0_41 = arith.constant 0 : index
    %c64 = arith.constant 64 : index
    %107 = vector.load %arg7[%c0_40, %c0_41, %c64] : memref<1x4x128xf32, #tpu.memory_space<vmem>>, vector<1x4x16xf32>
    %108 = vector.shape_cast %107 : vector<1x4x16xf32> to vector<4x16xf32>
    %109 = vector.shape_cast %106 : vector<4x16xf32> to vector<1x4x16xf32>
    tpu.vector_store %arg7[%c0_40, %c0_41, %c64], %109 {strides = array<i32>} : memref<1x4x128xf32, #tpu.memory_space<vmem>>, vector<1x4x16xf32>,
    %110 = vector.extract_strided_slice %6 {offsets = [0, 80], sizes = [8, 16], strides = [1, 1]} : vector<16x128xf32> to vector<8x16xf32>
    %111 = vector.extract_strided_slice %6 {offsets = [8, 80], sizes = [8, 16], strides = [1, 1]} : vector<16x128xf32> to vector<8x16xf32>
    %cst_42 = arith.constant dense<0.000000e+00> : vector<16x16xf32>
    %112 = tpu.matmul %110, %111, %cst_42 {dimension_numbers = #tpu.dot_dimension_numbers<[0], [0], [1], [1], [0, 1, 1, 1], [], []>} : vector<8x16xf32>, vector<8x16xf32>, vector<16x16xf32> -> vector<16x16xf32>
    %cst_43 = arith.constant dense<0xFF800000> : vector<16xf32>
    %113 = vector.multi_reduction <maximumf>, %112, %cst_43 [1] : vector<16x16xf32> to vector<16xf32>
    %114 = vector.shape_cast %113 : vector<16xf32> to vector<16x1xf32>
    %115 = vector.broadcast %114 : vector<16x1xf32> to vector<16x16xf32>
    %116 = arith.subf %112, %115 : vector<16x16xf32>
    %117 = math.exp %116 : vector<16x16xf32>
    %cst_44 = arith.constant dense<0.000000e+00> : vector<16xf32>
    %118 = vector.multi_reduction <add>, %117, %cst_44 [1] : vector<16x16xf32> to vector<16xf32>
    %119 = vector.shape_cast %118 : vector<16xf32> to vector<16x1xf32>
    %120 = tpu.reciprocal %119 : vector<16x1xf32> -> vector<16x1xf32>
    %121 = vector.broadcast %120 : vector<16x1xf32> to vector<16x16xf32>
    %122 = arith.mulf %117, %121 : vector<16x16xf32>
    %123 = vector.extract_strided_slice %8 {offsets = [0, 80], sizes = [4, 16], strides = [1, 1]} : vector<4x128xf32> to vector<4x16xf32>
    %cst_45 = arith.constant dense<0.000000e+00> : vector<4x16xf32>
    %124 = tpu.matmul %123, %122, %cst_45 {dimension_numbers = #tpu.dot_dimension_numbers<[1], [0], [0], [1], [0, 0, 1, 1], [], []>} : vector<4x16xf32>, vector<16x16xf32>, vector<4x16xf32> -> vector<4x16xf32>
    %125 = vector.extract_strided_slice %9 {offsets = [0, 80], sizes = [4, 16], strides = [1, 1]} : vector<4x128xf32> to vector<4x16xf32>
    %126 = arith.addf %124, %125 : vector<4x16xf32>
    %c0_46 = arith.constant 0 : index
    %c0_47 = arith.constant 0 : index
    %c80 = arith.constant 80 : index
    %127 = vector.load %arg7[%c0_46, %c0_47, %c80] : memref<1x4x128xf32, #tpu.memory_space<vmem>>, vector<1x4x16xf32>
    %128 = vector.shape_cast %127 : vector<1x4x16xf32> to vector<4x16xf32>
    %129 = vector.shape_cast %126 : vector<4x16xf32> to vector<1x4x16xf32>
    tpu.vector_store %arg7[%c0_46, %c0_47, %c80], %129 {strides = array<i32>} : memref<1x4x128xf32, #tpu.memory_space<vmem>>, vector<1x4x16xf32>,
    %130 = vector.extract_strided_slice %6 {offsets = [0, 96], sizes = [8, 16], strides = [1, 1]} : vector<16x128xf32> to vector<8x16xf32>
    %131 = vector.extract_strided_slice %6 {offsets = [8, 96], sizes = [8, 16], strides = [1, 1]} : vector<16x128xf32> to vector<8x16xf32>
    %cst_48 = arith.constant dense<0.000000e+00> : vector<16x16xf32>
    %132 = tpu.matmul %130, %131, %cst_48 {dimension_numbers = #tpu.dot_dimension_numbers<[0], [0], [1], [1], [0, 1, 1, 1], [], []>} : vector<8x16xf32>, vector<8x16xf32>, vector<16x16xf32> -> vector<16x16xf32>
    %cst_49 = arith.constant dense<0xFF800000> : vector<16xf32>
    %133 = vector.multi_reduction <maximumf>, %132, %cst_49 [1] : vector<16x16xf32> to vector<16xf32>
    %134 = vector.shape_cast %133 : vector<16xf32> to vector<16x1xf32>
    %135 = vector.broadcast %134 : vector<16x1xf32> to vector<16x16xf32>
    %136 = arith.subf %132, %135 : vector<16x16xf32>
    %137 = math.exp %136 : vector<16x16xf32>
    %cst_50 = arith.constant dense<0.000000e+00> : vector<16xf32>
    %138 = vector.multi_reduction <add>, %137, %cst_50 [1] : vector<16x16xf32> to vector<16xf32>
    %139 = vector.shape_cast %138 : vector<16xf32> to vector<16x1xf32>
    %140 = tpu.reciprocal %139 : vector<16x1xf32> -> vector<16x1xf32>
    %141 = vector.broadcast %140 : vector<16x1xf32> to vector<16x16xf32>
    %142 = arith.mulf %137, %141 : vector<16x16xf32>
    %143 = vector.extract_strided_slice %8 {offsets = [0, 96], sizes = [4, 16], strides = [1, 1]} : vector<4x128xf32> to vector<4x16xf32>
    %cst_51 = arith.constant dense<0.000000e+00> : vector<4x16xf32>
    %144 = tpu.matmul %143, %142, %cst_51 {dimension_numbers = #tpu.dot_dimension_numbers<[1], [0], [0], [1], [0, 0, 1, 1], [], []>} : vector<4x16xf32>, vector<16x16xf32>, vector<4x16xf32> -> vector<4x16xf32>
    %145 = vector.extract_strided_slice %9 {offsets = [0, 96], sizes = [4, 16], strides = [1, 1]} : vector<4x128xf32> to vector<4x16xf32>
    %146 = arith.addf %144, %145 : vector<4x16xf32>
    %c0_52 = arith.constant 0 : index
    %c0_53 = arith.constant 0 : index
    %c96 = arith.constant 96 : index
    %147 = vector.load %arg7[%c0_52, %c0_53, %c96] : memref<1x4x128xf32, #tpu.memory_space<vmem>>, vector<1x4x16xf32>
    %148 = vector.shape_cast %147 : vector<1x4x16xf32> to vector<4x16xf32>
    %149 = vector.shape_cast %146 : vector<4x16xf32> to vector<1x4x16xf32>
    tpu.vector_store %arg7[%c0_52, %c0_53, %c96], %149 {strides = array<i32>} : memref<1x4x128xf32, #tpu.memory_space<vmem>>, vector<1x4x16xf32>,
    %150 = vector.extract_strided_slice %6 {offsets = [0, 112], sizes = [8, 16], strides = [1, 1]} : vector<16x128xf32> to vector<8x16xf32>
    %151 = vector.extract_strided_slice %6 {offsets = [8, 112], sizes = [8, 16], strides = [1, 1]} : vector<16x128xf32> to vector<8x16xf32>
    %cst_54 = arith.constant dense<0.000000e+00> : vector<16x16xf32>
    %152 = tpu.matmul %150, %151, %cst_54 {dimension_numbers = #tpu.dot_dimension_numbers<[0], [0], [1], [1], [0, 1, 1, 1], [], []>} : vector<8x16xf32>, vector<8x16xf32>, vector<16x16xf32> -> vector<16x16xf32>
    %cst_55 = arith.constant dense<0xFF800000> : vector<16xf32>
    %153 = vector.multi_reduction <maximumf>, %152, %cst_55 [1] : vector<16x16xf32> to vector<16xf32>
    %154 = vector.shape_cast %153 : vector<16xf32> to vector<16x1xf32>
    %155 = vector.broadcast %154 : vector<16x1xf32> to vector<16x16xf32>
    %156 = arith.subf %152, %155 : vector<16x16xf32>
    %157 = math.exp %156 : vector<16x16xf32>
    %cst_56 = arith.constant dense<0.000000e+00> : vector<16xf32>
    %158 = vector.multi_reduction <add>, %157, %cst_56 [1] : vector<16x16xf32> to vector<16xf32>
    %159 = vector.shape_cast %158 : vector<16xf32> to vector<16x1xf32>
    %160 = tpu.reciprocal %159 : vector<16x1xf32> -> vector<16x1xf32>
    %161 = vector.broadcast %160 : vector<16x1xf32> to vector<16x16xf32>
    %162 = arith.mulf %157, %161 : vector<16x16xf32>
    %163 = vector.extract_strided_slice %8 {offsets = [0, 112], sizes = [4, 16], strides = [1, 1]} : vector<4x128xf32> to vector<4x16xf32>
    %cst_57 = arith.constant dense<0.000000e+00> : vector<4x16xf32>
    %164 = tpu.matmul %163, %162, %cst_57 {dimension_numbers = #tpu.dot_dimension_numbers<[1], [0], [0], [1], [0, 0, 1, 1], [], []>} : vector<4x16xf32>, vector<16x16xf32>, vector<4x16xf32> -> vector<4x16xf32>
    %165 = vector.extract_strided_slice %9 {offsets = [0, 112], sizes = [4, 16], strides = [1, 1]} : vector<4x128xf32> to vector<4x16xf32>
    %166 = arith.addf %164, %165 : vector<4x16xf32>
    %c0_58 = arith.constant 0 : index
    %c0_59 = arith.constant 0 : index
    %c112 = arith.constant 112 : index
    %167 = vector.load %arg7[%c0_58, %c0_59, %c112] : memref<1x4x128xf32, #tpu.memory_space<vmem>>, vector<1x4x16xf32>
    %168 = vector.shape_cast %167 : vector<1x4x16xf32> to vector<4x16xf32>
    %169 = vector.shape_cast %166 : vector<4x16xf32> to vector<1x4x16xf32>
    tpu.vector_store %arg7[%c0_58, %c0_59, %c112], %169 {strides = array<i32>} : memref<1x4x128xf32, #tpu.memory_space<vmem>>, vector<1x4x16xf32>,
    return
  }
  func.func @transform_0(%arg0: i32, %arg1: i32) -> (i32, i32, i32) {
    %c0_i32 = arith.constant 0 : i32
    %c0_i32_0 = arith.constant 0 : i32
    return %arg0, %c0_i32, %arg1 : i32, i32, i32
  }
  func.func @transform_1(%arg0: i32, %arg1: i32) -> (i32, i32) {
    %c0_i32 = arith.constant 0 : i32
    %c0_i32_0 = arith.constant 0 : i32
    %c0_i32_1 = arith.constant 0 : i32
    return %c0_i32, %c0_i32_0 : i32, i32
  }
  func.func @transform_2(%arg0: i32, %arg1: i32) -> (i32, i32) {
    %c0_i32 = arith.constant 0 : i32
    %c0_i32_0 = arith.constant 0 : i32
    %c0_i32_1 = arith.constant 0 : i32
    return %c0_i32, %c0_i32_0 : i32, i32
  }
  func.func @transform_3(%arg0: i32, %arg1: i32) -> (i32, i32, i32) {
    %c0_i32 = arith.constant 0 : i32
    %c0_i32_0 = arith.constant 0 : i32
    return %arg0, %c0_i32, %arg1 : i32, i32, i32
  }
  func.func @transform_4(%arg0: i32, %arg1: i32) -> (i32, i32) {
    %c0_i32 = arith.constant 0 : i32
    %c0_i32_0 = arith.constant 0 : i32
    return %c0_i32, %arg1 : i32, i32
  }
  func.func @transform_5(%arg0: i32, %arg1: i32) -> (i32, i32, i32) {
    %c0_i32 = arith.constant 0 : i32
    %c0_i32_0 = arith.constant 0 : i32
    return %arg0, %c0_i32, %arg1 : i32, i32, i32
  }
}

</mosaic_0001>

<bundles_post_ra>
// kernel: smhsa_forward.2
= control target key start
LH: loop header
LB: loop body
LE: loop exit
PB: predicated region body
PF: predicated region fallthrough
CT: control target
= control target key end

     0   :  { %vm44_vm0 = vcmask 64512   ;;  %vm366_vm1 = vcmask 31744   ;;  %s794_s1 = inlined_call_operand.vmem [shape: f32[8,4], index: 1, kind: input, shape index: {}]   ;;  %s795_s0 = inlined_call_operand.vmem [shape: f32[256,8], index: 0, kind: input, shape index: {}]   ;;  %s796_s2 = inlined_call_operand.vmem [shape: f32[256,4], index: 2, kind: output, shape index: {}]  }
   0x1   :  { %v43_v0 = vld [vmem:[%s794_s1] sm:$0xff]  ;;  %v12_v3 = vld [vmem:[%s795_s0 + $0x8] sm:$0xff]  ;;  %v13_v5 = vld [vmem:[%s795_s0 + $0x10] sm:$0xff] }
   0x2   :  { %v11_v1 = vld [vmem:[%s795_s0] sm:$0xff]  ;;  %468 = vmatprep.subr.mxu0 %v43_v0  ;;  %518 = vmatprep.subr.mxu1 %v43_v0  ;;  %v28_v4 = vld [vmem:[%s795_s0 + $0x88] sm:$0xff]  ;;  %v29_v6 = vld [vmem:[%s795_s0 + $0x90] sm:$0xff] }
   0x3   :  { %v27_v2 = vld [vmem:[%s795_s0 + $0x80] sm:$0xff]  ;;  %469 = vmatpush3.msra.mxu0 %v43_v0  ;;  %519 = vmatpush3.msra.mxu1 %v43_v0  ;;  %v14_v7 = vld [vmem:[%s795_s0 + $0x18] sm:$0xff]  ;;  %v16_v11 = vld [vmem:[%s795_s0 + $0x28] sm:$0xff] }
   0x4   :  { %470 = vmatprep.mubr.msk.f32.mxu0 %vm44_vm0, %v11_v1  ;;  %494 = vmatprep.mubr.msk.f32.mxu1 %vm44_vm0, %v27_v2  ;;  %v30_v8 = vld [vmem:[%s795_s0 + $0x98] sm:$0xff]  ;;  %v15_v9 = vld [vmem:[%s795_s0 + $0x20] sm:$0xff]  ;;  %v32_v12 = vld [vmem:[%s795_s0 + $0xa8] sm:$0xff] }
   0x5   :  { %471 = vmatmul.mubr.msk.f32.vlgmr.msra.gmra.mrb[0].mxu0 %vm44_vm0, %v12_v3  ;;  %495 = vmatmul.mubr.msk.f32.vlgmr.msra.gmra.mrb[0].mxu1 %vm44_vm0, %v28_v4  ;;  %v31_v10 = vld [vmem:[%s795_s0 + $0xa0] sm:$0xff]  ;;  %v17_v13 = vld [vmem:[%s795_s0 + $0x30] sm:$0xff]  ;;  %v18_v15 = vld [vmem:[%s795_s0 + $0x38] sm:$0xff] }
   0x6   :  { %473 = vmatprep.mubr.msk.f32.mxu0 %vm44_vm0, %v13_v5  ;;  %497 = vmatprep.mubr.msk.f32.mxu1 %vm44_vm0, %v29_v6  ;;  %v33_v14 = vld [vmem:[%s795_s0 + $0xb0] sm:$0xff]  ;;  %v34_v16 = vld [vmem:[%s795_s0 + $0xb8] sm:$0xff]  ;;  %v19_v17 = vld [vmem:[%s795_s0 + $0x40] sm:$0xff] }
   0x7   :  { %v35_v18 = vld [vmem:[%s795_s0 + $0xc0] sm:$0xff]  ;;  %v20_v19 = vld [vmem:[%s795_s0 + $0x48] sm:$0xff]  ;;  %v21_v21 = vld [vmem:[%s795_s0 + $0x50] sm:$0xff] }
   0x8   :  { %v36_v20 = vld [vmem:[%s795_s0 + $0xc8] sm:$0xff]  ;;  %v37_v22 = vld [vmem:[%s795_s0 + $0xd0] sm:$0xff]  ;;  %v22_v23 = vld [vmem:[%s795_s0 + $0x58] sm:$0xff] }
   0x9   :  { %474 = vmatmul.mubr.msk.f32.gmra.mrb[2].mxu0 %vm44_vm0, %v14_v7  ;;  %498 = vmatmul.mubr.msk.f32.gmra.mrb[2].mxu1 %vm44_vm0, %v30_v8  ;;  %v38_v24 = vld [vmem:[%s795_s0 + $0xd8] sm:$0xff]  ;;  %v23_v25 = vld [vmem:[%s795_s0 + $0x60] sm:$0xff]  ;;  %v24_v27 = vld [vmem:[%s795_s0 + $0x68] sm:$0xff] }
   0xa   :  { %476 = vmatprep.mubr.msk.f32.mxu0 %vm44_vm0, %v15_v9  ;;  %500 = vmatprep.mubr.msk.f32.mxu1 %vm44_vm0, %v31_v10  ;;  %v39_v26 = vld [vmem:[%s795_s0 + $0xe0] sm:$0xff]  ;;  %v40_v28 = vld [vmem:[%s795_s0 + $0xe8] sm:$0xff]  ;;  %v25_v29 = vld [vmem:[%s795_s0 + $0x70] sm:$0xff] }
   0xb   :  { %v41_v30 = vld [vmem:[%s795_s0 + $0xf0] sm:$0xff]  ;;  %v26_v31 = vld [vmem:[%s795_s0 + $0x78] sm:$0xff] }
   0xc   :  { %v42_v32 = vld [vmem:[%s795_s0 + $0xf8] sm:$0xff] }
   0xd   :  { %477 = vmatmul.mubr.msk.f32.gmra.mrb[4].mxu0 %vm44_vm0, %v16_v11  ;;  %501 = vmatmul.mubr.msk.f32.gmra.mrb[4].mxu1 %vm44_vm0, %v32_v12 }
   0xe   :  { %479 = vmatprep.mubr.msk.f32.mxu0 %vm44_vm0, %v17_v13  ;;  %503 = vmatprep.mubr.msk.f32.mxu1 %vm44_vm0, %v33_v14 }
  0x11   :  { %480 = vmatmul.mubr.msk.f32.gmra.mrb[6].mxu0 %vm44_vm0, %v18_v15  ;;  %504 = vmatmul.mubr.msk.f32.gmra.mrb[6].mxu1 %vm44_vm0, %v34_v16 }
  0x12   :  { %482 = vmatprep.mubr.msk.f32.mxu0 %vm44_vm0, %v19_v17  ;;  %506 = vmatprep.mubr.msk.f32.mxu1 %vm44_vm0, %v35_v18 }
  0x15   :  { %483 = vmatmul.mubr.msk.f32.gmra.mrb[8].mxu0 %vm44_vm0, %v20_v19  ;;  %507 = vmatmul.mubr.msk.f32.gmra.mrb[8].mxu1 %vm44_vm0, %v36_v20 }
  0x16   :  { %485 = vmatprep.mubr.msk.f32.mxu0 %vm44_vm0, %v21_v21  ;;  %509 = vmatprep.mubr.msk.f32.mxu1 %vm44_vm0, %v37_v22 }
  0x19   :  { %486 = vmatmul.mubr.msk.f32.gmra.mrb[10].mxu0 %vm44_vm0, %v22_v23  ;;  %510 = vmatmul.mubr.msk.f32.gmra.mrb[10].mxu1 %vm44_vm0, %v38_v24 }
  0x1a   :  { %488 = vmatprep.mubr.msk.f32.mxu0 %vm44_vm0, %v23_v25  ;;  %512 = vmatprep.mubr.msk.f32.mxu1 %vm44_vm0, %v39_v26 }
  0x1d   :  { %489 = vmatmul.mubr.msk.f32.gmra.mrb[12].mxu0 %vm44_vm0, %v24_v27  ;;  %513 = vmatmul.mubr.msk.f32.gmra.mrb[12].mxu1 %vm44_vm0, %v40_v28 }
  0x1e   :  { %491 = vmatprep.mubr.msk.f32.mxu0 %vm44_vm0, %v25_v29  ;;  %515 = vmatprep.mubr.msk.f32.mxu1 %vm44_vm0, %v41_v30 }
  0x21   :  { %492 = vmatmul.mubr.msk.f32.gmra.mrb[14].mxu0 %vm44_vm0, %v26_v31  ;;  %516 = vmatmul.mubr.msk.f32.gmra.mrb[14].mxu1 %vm44_vm0, %v42_v32 }
  0xd8   :  { %v472_v33 = vpop.f32.mrb[0].mxu0  ;;  %v496_v34 = vpop.f32.mrb[0].mxu1 }
  0xd9   :  { %368 = vst.msk [vmem:[%s796_s2 + $0x8] sm:$0xff] %vm366_vm1, %v472_v33  ;;  %384 = vst.msk [vmem:[%s796_s2 + $0x88] sm:$0xff] %vm366_vm1, %v496_v34  ;;  %v207_v35 = vpop.f32.mrb[1].mxu0  ;;  %v287_v36 = vpop.f32.mrb[1].mxu1 }
  0xda   :  { %367 = vst.msk [vmem:[%s796_s2] sm:$0xff] %vm366_vm1, %v207_v35  ;;  %383 = vst.msk [vmem:[%s796_s2 + $0x80] sm:$0xff] %vm366_vm1, %v287_v36 }
  0xdc   :  { %v475_v37 = vpop.f32.mrb[2].mxu0  ;;  %v499_v38 = vpop.f32.mrb[2].mxu1 }
  0xdd   :  { %370 = vst.msk [vmem:[%s796_s2 + $0x18] sm:$0xff] %vm366_vm1, %v475_v37  ;;  %386 = vst.msk [vmem:[%s796_s2 + $0x98] sm:$0xff] %vm366_vm1, %v499_v38  ;;  %v217_v39 = vpop.f32.mrb[3].mxu0  ;;  %v297_v40 = vpop.f32.mrb[3].mxu1 }
  0xde   :  { %369 = vst.msk [vmem:[%s796_s2 + $0x10] sm:$0xff] %vm366_vm1, %v217_v39  ;;  %385 = vst.msk [vmem:[%s796_s2 + $0x90] sm:$0xff] %vm366_vm1, %v297_v40 }
  0xe0   :  { %v478_v41 = vpop.f32.mrb[4].mxu0  ;;  %v502_v42 = vpop.f32.mrb[4].mxu1 }
  0xe1   :  { %372 = vst.msk [vmem:[%s796_s2 + $0x28] sm:$0xff] %vm366_vm1, %v478_v41  ;;  %388 = vst.msk [vmem:[%s796_s2 + $0xa8] sm:$0xff] %vm366_vm1, %v502_v42  ;;  %v227_v43 = vpop.f32.mrb[5].mxu0  ;;  %v307_v44 = vpop.f32.mrb[5].mxu1 }
  0xe2   :  { %371 = vst.msk [vmem:[%s796_s2 + $0x20] sm:$0xff] %vm366_vm1, %v227_v43  ;;  %387 = vst.msk [vmem:[%s796_s2 + $0xa0] sm:$0xff] %vm366_vm1, %v307_v44 }
  0xe4   :  { %v481_v45 = vpop.f32.mrb[6].mxu0  ;;  %v505_v46 = vpop.f32.mrb[6].mxu1 }
  0xe5   :  { %374 = vst.msk [vmem:[%s796_s2 + $0x38] sm:$0xff] %vm366_vm1, %v481_v45  ;;  %390 = vst.msk [vmem:[%s796_s2 + $0xb8] sm:$0xff] %vm366_vm1, %v505_v46  ;;  %v237_v47 = vpop.f32.mrb[7].mxu0  ;;  %v317_v48 = vpop.f32.mrb[7].mxu1 }
  0xe6   :  { %373 = vst.msk [vmem:[%s796_s2 + $0x30] sm:$0xff] %vm366_vm1, %v237_v47  ;;  %389 = vst.msk [vmem:[%s796_s2 + $0xb0] sm:$0xff] %vm366_vm1, %v317_v48 }
  0xe8   :  { %v484_v49 = vpop.f32.mrb[8].mxu0  ;;  %v508_v50 = vpop.f32.mrb[8].mxu1 }
  0xe9   :  { %376 = vst.msk [vmem:[%s796_s2 + $0x48] sm:$0xff] %vm366_vm1, %v484_v49  ;;  %392 = vst.msk [vmem:[%s796_s2 + $0xc8] sm:$0xff] %vm366_vm1, %v508_v50  ;;  %v247_v51 = vpop.f32.mrb[9].mxu0  ;;  %v327_v52 = vpop.f32.mrb[9].mxu1 }
  0xea   :  { %375 = vst.msk [vmem:[%s796_s2 + $0x40] sm:$0xff] %vm366_vm1, %v247_v51  ;;  %391 = vst.msk [vmem:[%s796_s2 + $0xc0] sm:$0xff] %vm366_vm1, %v327_v52 }
  0xec   :  { %v487_v53 = vpop.f32.mrb[10].mxu0  ;;  %v511_v54 = vpop.f32.mrb[10].mxu1 }
  0xed   :  { %378 = vst.msk [vmem:[%s796_s2 + $0x58] sm:$0xff] %vm366_vm1, %v487_v53  ;;  %394 = vst.msk [vmem:[%s796_s2 + $0xd8] sm:$0xff] %vm366_vm1, %v511_v54  ;;  %v257_v55 = vpop.f32.mrb[11].mxu0  ;;  %v337_v56 = vpop.f32.mrb[11].mxu1 }
  0xee   :  { %377 = vst.msk [vmem:[%s796_s2 + $0x50] sm:$0xff] %vm366_vm1, %v257_v55  ;;  %393 = vst.msk [vmem:[%s796_s2 + $0xd0] sm:$0xff] %vm366_vm1, %v337_v56 }
  0xf0   :  { %v490_v57 = vpop.f32.mrb[12].mxu0  ;;  %v514_v58 = vpop.f32.mrb[12].mxu1 }
  0xf1   :  { %380 = vst.msk [vmem:[%s796_s2 + $0x68] sm:$0xff] %vm366_vm1, %v490_v57  ;;  %396 = vst.msk [vmem:[%s796_s2 + $0xe8] sm:$0xff] %vm366_vm1, %v514_v58  ;;  %v267_v59 = vpop.f32.mrb[13].mxu0  ;;  %v347_v60 = vpop.f32.mrb[13].mxu1 }
  0xf2   :  { %379 = vst.msk [vmem:[%s796_s2 + $0x60] sm:$0xff] %vm366_vm1, %v267_v59  ;;  %395 = vst.msk [vmem:[%s796_s2 + $0xe0] sm:$0xff] %vm366_vm1, %v347_v60 }
  0xf4   :  { %v493_v61 = vpop.f32.mrb[14].mxu0  ;;  %v517_v62 = vpop.f32.mrb[14].mxu1 }
  0xf5   :  { %382 = vst.msk [vmem:[%s796_s2 + $0x78] sm:$0xff] %vm366_vm1, %v493_v61  ;;  %398 = vst.msk [vmem:[%s796_s2 + $0xf8] sm:$0xff] %vm366_vm1, %v517_v62  ;;  %v277_v63 = vpop.f32.mrb[15].mxu0  ;;  %v357_v0 = vpop.f32.mrb[15].mxu1 }
  0xf6   :  { %381 = vst.msk [vmem:[%s796_s2 + $0x70] sm:$0xff] %vm366_vm1, %v277_v63  ;;  %397 = vst.msk [vmem:[%s796_s2 + $0xf0] sm:$0xff] %vm366_vm1, %v357_v0 }

// kernel: smhsa_forward.3
= control target key start
LH: loop header
LB: loop body
LE: loop exit
PB: predicated region body
PF: predicated region fallthrough
CT: control target
= control target key end

     0   :  { %s2660_s18 = smov 0   ;;  %s2662_s19 = smov 0   ;;  %s3001_s0 = inlined_call_operand.vmem [shape: f32[2,8,128], index: 0, kind: input, shape index: {}]   ;;  %s3002_s1 = inlined_call_operand.vmem [shape: f32[16,8], index: 1, kind: input, shape index: {}]   ;;  %s3003_s2 = inlined_call_operand.vmem [shape: f32[16,1], index: 2, kind: input, shape index: {}]   ;;  %s3004_s3 = inlined_call_operand.vmem [shape: f32[2,4,128], index: 3, kind: input, shape index: {}]   ;;  %s3005_s4 = inlined_call_operand.vmem [shape: f32[4,128], index: 4, kind: input, shape index: {}]   ;;  %s3006_s5 = inlined_call_operand.vmem [shape: f32[2,4,128], index: 5, kind: output, shape index: {}]  }
   0x1   :  { %s2664_s20 = smov 0  }
   0x2 LB: > { %s27_s21 = sadd.s32 1, %s2613_s19  ;;  %p2287_p0 = scmp.ge.s32.totalorder %s2617_s20, 1  ;;  %s2617_s20 = sphi %s2664_s20, %s15_s20   ;;  %s2613_s19 = sphi %s2662_s19, %s3008_s19   ;;  %s2609_s18 = sphi %s2660_s18, %s3007_s18  }
   0x3   : > { %p29_p1 = scmp.ge.s32.totalorder %s27_s21, 2  ;;  %p228_p2 = scmp.lt.s32.totalorder %s2617_s20, 3 }
   0x5   : > { %s3010_s21 = smov (%p29_p1, %s27_s21), 0  ;;  %p229_p3 = pnand %p2287_p0, %p228_p2 }
   0x6   : > { %p271_p4 = scmp.lt.s32.totalorder (!%p229_p3), %s2609_s18, 1  ;;  %v296_v0 = vld [vmem:[%s3002_s1] sm:$0xff] (!%p229_p3)  ;;  %vm311_vm0 = vcmask (!%p229_p3), 64512   ;;  %v2619_v2 = vmov (!%p229_p3), 0   ;;  %v300_v3 = vld [vmem:[%s3003_s2 + $0x8] sm:$0xff] (!%p229_p3)  ;;  %s2620_s9 = smov (!%p229_p3), 96  }
   0x7   : > { %232 = sbr.rel (%p229_p3) target bundleno = 1453 (0x5ad), region = 40  ;;  %v299_v1 = vld [vmem:[%s3003_s2] sm:$0xff] (!%p229_p3)  ;;  %2372 = vmatprep.mubr.msk.f32.mxu0 (!%p229_p3), %vm311_vm0, %v296_v0  ;;  %2530 = vset.pattern.permute.xlu0 (!%p229_p3), %v2619_v2  ;;  %v297_v5 = vld [vmem:[%s3002_s1 + $0x8] sm:$0xff] (!%p229_p3)  ;;  %s2621_s10 = smov (!%p229_p3), 112   ;;  %vm508_vm1 = vcmask (!%p229_p3), 130048   ;;  %vm2628_vm2 = vmmov (!%p229_p3), 0  }
   0x8   : > { %303 = vperm.xlu0 (!%p229_p3), %2530, %v299_v1   ;;  %s2622_s11 = smov (!%p229_p3), 64   ;;  %s2623_s12 = smov (!%p229_p3), 80   ;;  %vm604_vm3 = vcmask (!%p229_p3), 125952   ;;  %vm831_vm4 = vcmask (!%p229_p3), 257152   ;;  %vm1055_vm5 = vcmask (!%p229_p3), 388352   ;;  %vm1279_vm6 = vcmask (!%p229_p3), 519552  }
   0x9   : > { %s2624_s13 = smov (!%p229_p3), 48   ;;  %s2625_s14 = smov (!%p229_p3), 32   ;;  %vm1503_vm7 = vcmask (!%p229_p3), 650752   ;;  %vm1727_vm8 = vcmask (!%p229_p3), 781952   ;;  %vm1951_vm9 = vcmask (!%p229_p3), 913152   ;;  %vm2175_vm10 = vcmask (!%p229_p3), 1044352  }
   0xa   : > { %s2626_s15 = smov (!%p229_p3), 16  }
   0xc   : > { %308 = vperm.xlu0 (!%p229_p3), %2530, %v300_v3  }
   0xe   : > { %s3012_s18 = smov (!%p271_p4, %s2609_s18), 1 }
   0xf   : > { %s2288_s28 = sshll.u32 %s3012_s18, 3  ;;  %s2289_s16 = sshll.u32 %s3012_s18, 2 }
  0x10   : > { %s277_s6 = scalar_lea.vmem %s3001_s0, %s2288_s28  ;;  %s284_s23 = scalar_lea.vmem %s3004_s3, %s2289_s16 }
  0x11   : > { %v298_v4 = vld [vmem:[%s277_s6] sm:$0xff]  ;;  %s2973_s28 = scalar_lea.vmem %s3006_s5, %s2289_s16 }
  0x12   : > { %2370 = vmatprep.subr.mxu0 %v298_v4  ;;  %v2720_v27 = vld [vmem:[%s284_s23] sm:$0xf] }
  0x13   : > { %2371 = vmatpush3.msra.mxu0 %v298_v4 }
  0x14   : > { %2373 = vmatmul.mubr.msk.f32.vlgmr.msra.gmra.mrb[0].mxu0 %vm311_vm0, %v297_v5 }
  0x87   : > { %v304_v6 = vpop.permute.xlu0 %303 }
  0x8b   : > { %v309_v7 = vpop.permute.xlu0 %308 }
  0xe7   : > { %v2374_v8 = vpop.f32.mrb[0].mxu0 }
  0xe8   : > { %v390_v9 = vadd.f32 %v2374_v8, %v309_v7  ;;  %v384_v10 = vpop.f32.mrb[1].mxu0 }
  0xe9   : > { %v385_v11 = vadd.f32 %v384_v10, %v304_v6  ;;  %v2799_v10 = vld [vmem:[%s3005_s4] sm:$0xf] }
  0xea   : > { %868 = vrot.lane.b32.xlu0 %v390_v9, %s2620_s9  ;;  %643 = vrot.lane.b32.xlu1 %v390_v9, %s2621_s10 }
  0xeb   : > { %2375 = vmatprep.subr.mxu1 %v390_v9 }
  0xec   : > { %2376 = vmatpush3.msra.mxu1 %v390_v9 }
  0xee   : > { %1316 = vrot.lane.b32.xlu0 %v390_v9, %s2622_s11  ;;  %1092 = vrot.lane.b32.xlu1 %v390_v9, %s2623_s12 }
  0xf2   : > { %1540 = vrot.lane.b32.xlu1 %v390_v9, %s2624_s13  ;;  %1057 = vrot.lane.b32.xlu0 %v385_v11, %s2623_s12 }
  0xf6   : > { %1764 = vrot.lane.b32.xlu1 %v390_v9, %s2625_s14  ;;  %1505 = vrot.lane.b32.xlu0 %v385_v11, %s2624_s13 }
  0xfa   : > { %1953 = vrot.lane.b32.xlu0 %v385_v11, %s2626_s15  ;;  %607 = vrot.lane.b32.xlu1 %v385_v11, %s2621_s10 }
  0xfe   : > { %833 = vrot.lane.b32.xlu1 %v385_v11, %s2620_s9 }
 0x102   : > { %1281 = vrot.lane.b32.xlu1 %v385_v11, %s2622_s11 }
 0x106   : > { %1729 = vrot.lane.b32.xlu1 %v385_v11, %s2625_s14 }
 0x118   : > { %395 = vxpose.xlu0.b32.start.end [1/1] (short) (narrow) %v385_v11, 16 }
 0x145   : > { %1988 = vrot.lane.b32.xlu0 %v390_v9, %s2626_s15 }
 0x15c   : > { %v644_v12 = vpop.permute.xlu1 %643  ;;  %v869_v16 = vpop.permute.xlu0 %868 }
 0x15d   : > { %2387 = vmatprep.subr.mxu1 %v644_v12 }
 0x160   : > { %v1093_v13 = vpop.permute.xlu1 %1092  ;;  %v1317_v18 = vpop.permute.xlu0 %1316 }
 0x164   : > { %v1541_v14 = vpop.permute.xlu1 %1540  ;;  %v1058_v20 = vpop.permute.xlu0 %1057 }
 0x168   : > { %v1765_v15 = vpop.permute.xlu1 %1764  ;;  %v1506_v22 = vpop.permute.xlu0 %1505 }
 0x16c   : > { %v608_v17 = vpop.permute.xlu1 %607  ;;  %v1954_v24 = vpop.permute.xlu0 %1953 }
 0x16d   : > { %610 = vxpose.xlu1.b32.start.end [1/1] (short) (narrow) %v608_v17, 16 }
 0x170   : > { %v834_v19 = vpop.permute.xlu1 %833 }
 0x172   : > { %836 = vxpose.xlu1.b32.start.end [1/1] (short) (narrow) %v834_v19, 16 }
 0x174   : > { %v1282_v21 = vpop.permute.xlu1 %1281 }
 0x177   : > { %1060 = vxpose.xlu1.b32.start.end [1/1] (short) (narrow) %v1058_v20, 16 }
 0x178   : > { %v1730_v23 = vpop.permute.xlu1 %1729 }
 0x17c   : > { %1284 = vxpose.xlu1.b32.start.end [1/1] (short) (narrow) %v1282_v21, 16 }
 0x181   : > { %1508 = vxpose.xlu1.b32.start.end [1/1] (short) (narrow) %v1506_v22, 16 }
 0x186   : > { %1732 = vxpose.xlu1.b32.start.end [1/1] (short) (narrow) %v1730_v23, 16 }
 0x18b   : > { %1956 = vxpose.xlu1.b32.start.end [1/1] (short) (narrow) %v1954_v24, 16 }
 0x198   : > { %v411_v25 = vpop.trf.xlu0 }
 0x199   : > { %2377 = vmatprep.mubr.msk.f32.mxu1 %vm311_vm0, %v411_v25 }
 0x19c   : > { %v412_v26 = vpop.trf.xlu0 }
 0x19d   : > { %2378 = vmatmul.mubr.msk.f32.vlgmr.msra.gmra.mrb[0].mxu1 %vm311_vm0, %v412_v26 }
 0x19e   : > { %2388 = vmatpush3.msra.mxu1 %v644_v12 }
 0x19f   : > { %2399 = vmatprep.subr.mxu1 %v869_v16 }
 0x1ad   : > { %749 = vrot.lane.b32.xlu1 %v2720_v27, %s2621_s10 }
 0x1b7   : > { %v1989_v38 = vpop.permute.xlu0 %1988 }
 0x1ed   : > { %v626_v28 = vpop.trf.xlu1 }
 0x1ee   : > { %2389 = vmatprep.mubr.msk.f32.mxu1 %vm311_vm0, %v626_v28 }
 0x1f1   : > { %v627_v29 = vpop.trf.xlu1 }
 0x1f2   : > { %2390 = vmatmul.mubr.msk.f32.vlgmr.msra.gmra.mrb[2].mxu1 %vm311_vm0, %v627_v29 }
 0x1f3   : > { %2400 = vmatpush3.msra.mxu1 %v869_v16 }
 0x1f4   : > { %2411 = vmatprep.subr.mxu1 %v1093_v13 }
 0x1f5   : > { %v852_v30 = vpop.trf.xlu1 }
 0x1f6   : > { %2401 = vmatprep.mubr.msk.f32.mxu1 %vm311_vm0, %v852_v30 }
 0x1f9   : > { %v853_v31 = vpop.trf.xlu1 }
 0x1fa   : > { %2402 = vmatmul.mubr.msk.f32.vlgmr.msra.gmra.mrb[4].mxu1 %vm311_vm0, %v853_v31 }
 0x1fb   : > { %2412 = vmatpush3.msra.mxu1 %v1093_v13 }
 0x1fc   : > { %2423 = vmatprep.subr.mxu1 %v1317_v18 }
 0x1fd   : > { %v1076_v32 = vpop.trf.xlu1 }
 0x1fe   : > { %2413 = vmatprep.mubr.msk.f32.mxu1 %vm311_vm0, %v1076_v32 }
 0x201   : > { %v1077_v33 = vpop.trf.xlu1 }
 0x202   : > { %2414 = vmatmul.mubr.msk.f32.vlgmr.msra.gmra.mrb[6].mxu1 %vm311_vm0, %v1077_v33 }
 0x203   : > { %2424 = vmatpush3.msra.mxu1 %v1317_v18 }
 0x204   : > { %2435 = vmatprep.subr.mxu1 %v1541_v14 }
 0x205   : > { %v1300_v34 = vpop.trf.xlu1 }
 0x206   : > { %2425 = vmatprep.mubr.msk.f32.mxu1 %vm311_vm0, %v1300_v34 }
 0x209   : > { %v1301_v35 = vpop.trf.xlu1 }
 0x20a   : > { %2426 = vmatmul.mubr.msk.f32.vlgmr.msra.gmra.mrb[8].mxu1 %vm311_vm0, %v1301_v35 }
 0x20b   : > { %2436 = vmatpush3.msra.mxu1 %v1541_v14 }
 0x20c   : > { %2447 = vmatprep.subr.mxu1 %v1765_v15 }
 0x20d   : > { %v1524_v36 = vpop.trf.xlu1 }
 0x20e   : > { %2437 = vmatprep.mubr.msk.f32.mxu1 %vm311_vm0, %v1524_v36 }
 0x211   : > { %v1525_v37 = vpop.trf.xlu1 }
 0x212   : > { %2438 = vmatmul.mubr.msk.f32.vlgmr.msra.gmra.mrb[10].mxu1 %vm311_vm0, %v1525_v37 }
 0x213   : > { %2448 = vmatpush3.msra.mxu1 %v1765_v15 }
 0x214   : > { %2459 = vmatprep.subr.mxu1 %v1989_v38 }
 0x215   : > { %v1748_v39 = vpop.trf.xlu1 }
 0x216   : > { %2449 = vmatprep.mubr.msk.f32.mxu1 %vm311_vm0, %v1748_v39 }
 0x219   : > { %v1749_v40 = vpop.trf.xlu1 }
 0x21a   : > { %2450 = vmatmul.mubr.msk.f32.vlgmr.msra.gmra.mrb[12].mxu1 %vm311_vm0, %v1749_v40 }
 0x21b   : > { %2460 = vmatpush3.msra.mxu1 %v1989_v38 }
 0x21d   : > { %v1972_v41 = vpop.trf.xlu1 }
 0x21e   : > { %2461 = vmatprep.mubr.msk.f32.mxu1 %vm311_vm0, %v1972_v41 }
 0x221   : > { %v1973_v42 = vpop.trf.xlu1 }
 0x222   : > { %2462 = vmatmul.mubr.msk.f32.vlgmr.msra.gmra.mrb[14].mxu1 %vm311_vm0, %v1973_v42 }
 0x225   : > { %v2803_v11 = vpop.permute.xlu1 %749 }
 0x270   : > { %v2379_v43 = vpop.f32.mrb[0].mxu1 }
 0x271   : > { %v2738_v44 = vpop.f32.mrb[1].mxu1  ;;  %v512_v45 = vsel %vm508_vm1, %v2379_v43, -inf }
 0x272   : > { %513 = vmax.xlane.f32.xlu1 %v512_v45  ;;  %v509_v46 = vsel %vm508_vm1, %v2738_v44, -inf }
 0x273   : > { %510 = vmax.xlane.f32.xlu0 %v509_v46 }
 0x2c5   : > { %v2391_v47 = vpop.f32.mrb[2].mxu1 }
 0x2c6   : > { %v2743_v48 = vpop.f32.mrb[3].mxu1  ;;  %v730_v49 = vsel %vm508_vm1, %v2391_v47, -inf }
 0x2c7   : > { %731 = vmax.xlane.f32.xlu0 %v730_v49  ;;  %v727_v50 = vsel %vm508_vm1, %v2743_v48, -inf }
 0x2cb   : > { %728 = vmax.xlane.f32.xlu0 %v727_v50 }
 0x2cd   : > { %v2748_v51 = vpop.f32.mrb[4].mxu1 }
 0x2ce   : > { %v2750_v52 = vpop.f32.mrb[5].mxu1  ;;  %v955_v53 = vsel %vm508_vm1, %v2748_v51, -inf }
 0x2cf   : > { %956 = vmax.xlane.f32.xlu0 %v955_v53  ;;  %v952_v54 = vsel %vm508_vm1, %v2750_v52, -inf }
 0x2d3   : > { %953 = vmax.xlane.f32.xlu0 %v952_v54 }
 0x2d5   : > { %v2756_v55 = vpop.f32.mrb[6].mxu1 }
 0x2d6   : > { %v2758_v56 = vpop.f32.mrb[7].mxu1  ;;  %v1179_v57 = vsel %vm508_vm1, %v2756_v55, -inf }
 0x2d7   : > { %1180 = vmax.xlane.f32.xlu0 %v1179_v57  ;;  %v1176_v58 = vsel %vm508_vm1, %v2758_v56, -inf }
 0x2d8   : > { %1177 = vmax.xlane.f32.xlu1 %v1176_v58 }
 0x2dd   : > { %v2764_v59 = vpop.f32.mrb[8].mxu1 }
 0x2de   : > { %v2766_v60 = vpop.f32.mrb[9].mxu1  ;;  %v1403_v61 = vsel %vm508_vm1, %v2764_v59, -inf }
 0x2df   : > { %1404 = vmax.xlane.f32.xlu0 %v1403_v61  ;;  %v1400_v62 = vsel %vm508_vm1, %v2766_v60, -inf }
 0x2e0   : > { %1401 = vmax.xlane.f32.xlu1 %v1400_v62 }
 0x2e5   : > { %v2772_v63 = vpop.f32.mrb[10].mxu1 }
 0x2e6   : > { %v2774_v0 = vpop.f32.mrb[11].mxu1  ;;  %v1627_v1 = vsel %vm508_vm1, %v2772_v63, -inf }
 0x2e7   : > { %1628 = vmax.xlane.f32.xlu0 %v1627_v1  ;;  %v1624_v2 = vsel %vm508_vm1, %v2774_v0, -inf }
 0x2e8   : > { %1625 = vmax.xlane.f32.xlu1 %v1624_v2 }
 0x2ed   : > { %v2780_v3 = vpop.f32.mrb[12].mxu1 }
 0x2ee   : > { %v2782_v4 = vpop.f32.mrb[13].mxu1  ;;  %v1851_v5 = vsel %vm508_vm1, %v2780_v3, -inf }
 0x2ef   : > { %1852 = vmax.xlane.f32.xlu0 %v1851_v5  ;;  %v1848_v6 = vsel %vm508_vm1, %v2782_v4, -inf }
 0x2f0   : > { %1849 = vmax.xlane.f32.xlu1 %v1848_v6  ;;  %v2627_v6 = vmov 0.0|0.0  }
 0x2f1   : > { %2471 = vmatprep.subr.bf16.mxu0 %v2627_v6 }
 0x2f5   : > { %v2788_v7 = vpop.f32.mrb[14].mxu1 }
 0x2f6   : > { %v2075_v8 = vsel %vm508_vm1, %v2788_v7, -inf  ;;  %v2792_v9 = vpop.f32.mrb[15].mxu1 }
 0x2f7   : > { %2076 = vmax.xlane.f32.xlu0 %v2075_v8  ;;  %v2072_v15 = vsel %vm508_vm1, %v2792_v9, -inf }
 0x2ff   : > { %v514_v12 = vpop.xlane.xlu1 %513 }
 0x300   : > { %v516_v13 = vsub.f32 %v2379_v43, %v514_v12  ;;  %v511_v18 = vpop.xlane.xlu0 %510 }
 0x301   : > { %1198 = vrot.lane.b32.xlu1 %v2720_v27, %s2623_s12  ;;  %v515_v19 = vsub.f32 %v2738_v44, %v511_v18 }
 0x302   : > { %v519_v14 = vmul.f32 1.442695, %v516_v13 }
 0x303   : > { %v517_v20 = vmul.f32 1.442695, %v515_v19 }
 0x304   : > { %2531 = vpow2.f32 %v519_v14 }
 0x305   : > { %2533 = vpow2.f32 %v517_v20 }
 0x30d   : > { %752 = vrot.lane.b32.xlu0 %v2799_v10, %s2621_s10 }
 0x30e   : > { %v2809_v16 = vpop.eup %2531 }
 0x30f   : > { %v524_v17 = vsel %vm508_vm1, %v2809_v16, 0.0  ;;  %v2819_v26 = vpop.eup %2533 }
 0x310   : > { %v521_v31 = vsel %vm508_vm1, %v2819_v26, 0.0 }
 0x311   : > { %974 = vrot.lane.b32.xlu0 %v2720_v27, %s2620_s9 }
 0x325   : > { %2073 = vmax.xlane.f32.xlu1 %v2072_v15 }
 0x330   : > { %525 = vadd.xlane.f32.xlu0 %v524_v17 }
 0x336   : > { %1422 = vrot.lane.b32.xlu1 %v2720_v27, %s2622_s11 }
 0x33a   : > { %1646 = vrot.lane.b32.xlu1 %v2720_v27, %s2624_s13 }
 0x354   : > { %v732_v21 = vpop.xlane.xlu0 %731 }
 0x355   : > { %v734_v22 = vsub.f32 %v2391_v47, %v732_v21 }
 0x357   : > { %v737_v23 = vmul.f32 1.442695, %v734_v22 }
 0x358   : > { %v729_v24 = vpop.xlane.xlu0 %728 }
 0x359   : > { %2535 = vpow2.f32 %v737_v23  ;;  %v733_v25 = vsub.f32 %v2743_v48, %v729_v24 }
 0x35b   : > { %v735_v28 = vmul.f32 1.442695, %v733_v25 }
 0x35c   : > { %v957_v29 = vpop.xlane.xlu0 %956 }
 0x35d   : > { %2537 = vpow2.f32 %v735_v28  ;;  %v959_v30 = vsub.f32 %v2748_v51, %v957_v29 }
 0x35e   : > { %522 = vadd.xlane.f32.xlu1 %v521_v31 }
 0x35f   : > { %v962_v32 = vmul.f32 1.442695, %v959_v30 }
 0x360   : > { %v954_v33 = vpop.xlane.xlu0 %953 }
 0x361   : > { %2539 = vpow2.f32 %v962_v32  ;;  %v958_v34 = vsub.f32 %v2750_v52, %v954_v33 }
 0x363   : > { %v2825_v35 = vpop.eup %2535  ;;  %v960_v36 = vmul.f32 1.442695, %v958_v34 }
 0x364   : > { %v1181_v37 = vpop.xlane.xlu0 %1180  ;;  %v742_v38 = vsel %vm508_vm1, %v2825_v35, 0.0 }
 0x365   : > { %2541 = vpow2.f32 %v960_v36  ;;  %v1183_v39 = vsub.f32 %v2756_v55, %v1181_v37  ;;  %743 = vadd.xlane.f32.xlu0 %v742_v38  ;;  %v1178_v40 = vpop.xlane.xlu1 %1177 }
 0x366   : > { %v1182_v41 = vsub.f32 %v2758_v56, %v1178_v40 }
 0x367   : > { %v2831_v42 = vpop.eup %2537  ;;  %v1186_v43 = vmul.f32 1.442695, %v1183_v39 }
 0x368   : > { %v1184_v44 = vmul.f32 1.442695, %v1182_v41  ;;  %v739_v45 = vsel %vm508_vm1, %v2831_v42, 0.0 }
 0x369   : > { %2543 = vpow2.f32 %v1186_v43  ;;  %740 = vadd.xlane.f32.xlu1 %v739_v45 }
 0x36a   : > { %2545 = vpow2.f32 %v1184_v44 }
 0x36b   : > { %v2835_v46 = vpop.eup %2539 }
 0x36c   : > { %v1405_v47 = vpop.xlane.xlu0 %1404  ;;  %v967_v48 = vsel %vm508_vm1, %v2835_v46, 0.0 }
 0x36d   : > { %v1407_v49 = vsub.f32 %v2764_v59, %v1405_v47  ;;  %968 = vadd.xlane.f32.xlu0 %v967_v48  ;;  %v1402_v50 = vpop.xlane.xlu1 %1401 }
 0x36e   : > { %v1406_v51 = vsub.f32 %v2766_v60, %v1402_v50 }
 0x36f   : > { %v2841_v52 = vpop.eup %2541  ;;  %v1410_v53 = vmul.f32 1.442695, %v1407_v49 }
 0x370   : > { %v1408_v54 = vmul.f32 1.442695, %v1406_v51  ;;  %v964_v55 = vsel %vm508_vm1, %v2841_v52, 0.0 }
 0x371   : > { %2547 = vpow2.f32 %v1410_v53  ;;  %965 = vadd.xlane.f32.xlu1 %v964_v55 }
 0x372   : > { %2549 = vpow2.f32 %v1408_v54 }
 0x373   : > { %v2845_v56 = vpop.eup %2543 }
 0x374   : > { %v2847_v57 = vpop.eup %2545  ;;  %v1629_v58 = vpop.xlane.xlu0 %1628  ;;  %v1191_v59 = vsel %vm508_vm1, %v2845_v56, 0.0 }
 0x375   : > { %v1631_v60 = vsub.f32 %v2772_v63, %v1629_v58  ;;  %1192 = vadd.xlane.f32.xlu1 %v1191_v59  ;;  %v1626_v61 = vpop.xlane.xlu1 %1625  ;;  %v1188_v62 = vsel %vm508_vm1, %v2847_v57, 0.0 }
 0x376   : > { %v1630_v1 = vsub.f32 %v2774_v0, %v1626_v61  ;;  %1189 = vadd.xlane.f32.xlu0 %v1188_v62 }
 0x377   : > { %v1634_v2 = vmul.f32 1.442695, %v1631_v60 }
 0x378   : > { %v1632_v5 = vmul.f32 1.442695, %v1630_v1 }
 0x379   : > { %2551 = vpow2.f32 %v1634_v2 }
 0x37a   : > { %2553 = vpow2.f32 %v1632_v5 }
 0x37b   : > { %v2856_v8 = vpop.eup %2547 }
 0x37c   : > { %v2858_v12 = vpop.eup %2549  ;;  %v1853_v63 = vpop.xlane.xlu0 %1852  ;;  %v1415_v13 = vsel %vm508_vm1, %v2856_v8, 0.0 }
 0x37d   : > { %v1855_v14 = vsub.f32 %v2780_v3, %v1853_v63  ;;  %1416 = vadd.xlane.f32.xlu1 %v1415_v13  ;;  %v1850_v0 = vpop.xlane.xlu1 %1849  ;;  %v1412_v15 = vsel %vm508_vm1, %v2858_v12, 0.0 }
 0x37e   : > { %v1854_v17 = vsub.f32 %v2782_v4, %v1850_v0  ;;  %1413 = vadd.xlane.f32.xlu0 %v1412_v15  ;;  %v2629_v4 = vmov 0.0  }
 0x37f   : > { %v1858_v18 = vmul.f32 1.442695, %v1855_v14  ;;  %2384 = vmatprep.mubr.msk.f32.mxu0 %vm2628_vm2, %v2629_v4 }
 0x380   : > { %v1856_v19 = vmul.f32 1.442695, %v1854_v17 }
 0x381   : > { %2555 = vpow2.f32 %v1858_v18  ;;  %v2891_v33 = vpop.permute.xlu1 %1198 }
 0x382   : > { %2557 = vpow2.f32 %v1856_v19 }
 0x383   : > { %v2866_v20 = vpop.eup %2551 }
 0x384   : > { %v2868_v21 = vpop.eup %2553  ;;  %v2077_v22 = vpop.xlane.xlu0 %2076  ;;  %v1639_v3 = vsel %vm508_vm1, %v2866_v20, 0.0 }
 0x385   : > { %v2079_v23 = vsub.f32 %v2788_v7, %v2077_v22  ;;  %1640 = vadd.xlane.f32.xlu1 %v1639_v3  ;;  %v1636_v24 = vsel %vm508_vm1, %v2868_v21, 0.0 }
 0x386   : > { %1637 = vadd.xlane.f32.xlu0 %v1636_v24 }
 0x387   : > { %v2082_v25 = vmul.f32 1.442695, %v2079_v23 }
 0x388   : > { %v2900_v40 = vpop.permute.xlu0 %752 }
 0x389   : > { %2559 = vpow2.f32 %v2082_v25 }
 0x38b   : > { %v2877_v28 = vpop.eup %2555 }
 0x38c   : > { %v2879_v29 = vpop.eup %2557  ;;  %v1863_v30 = vsel %vm508_vm1, %v2877_v28, 0.0  ;;  %v975_v43 = vpop.permute.xlu0 %974 }
 0x38d   : > { %1864 = vadd.xlane.f32.xlu1 %v1863_v30  ;;  %v1860_v7 = vsel %vm508_vm1, %v2879_v29, 0.0 }
 0x38e   : > { %1861 = vadd.xlane.f32.xlu0 %v1860_v7 }
 0x393   : > { %v2885_v31 = vpop.eup %2559 }
 0x394   : > { %v2087_v32 = vsel %vm508_vm1, %v2885_v31, 0.0 }
 0x395   : > { %2088 = vadd.xlane.f32.xlu1 %v2087_v32 }
 0x3a6   : > { %2094 = vrot.lane.b32.xlu1 %v2720_v27, %s2626_s15 }
 0x3b2   : > { %v2074_v34 = vpop.xlane.xlu1 %2073 }
 0x3b3   : > { %v2078_v36 = vsub.f32 %v2792_v9, %v2074_v34 }
 0x3b5   : > { %v2080_v37 = vmul.f32 1.442695, %v2078_v36 }
 0x3b6   : > { %v2904_v41 = vpop.permute.xlu1 %1422 }
 0x3b7   : > { %2561 = vpow2.f32 %v2080_v37 }
 0x3ba   : > { %v2908_v9 = vpop.permute.xlu1 %1646 }
 0x3bd   : > { %v526_v44 = vpop.xlane.xlu0 %525 }
 0x3be   : > { %2563 = vrcp.f32 %v526_v44 }
 0x3c1   : > { %v2894_v38 = vpop.eup %2561 }
 0x3c2   : > { %v2084_v39 = vsel %vm508_vm1, %v2894_v38, 0.0 }
 0x3c3   : > { %2085 = vadd.xlane.f32.xlu0 %v2084_v39 }
 0x3c8   : > { %v2564_v48 = vpop.eup %2563 }
 0x3c9   : > { %v530_v53 = vmul.f32 %v2564_v48, %v2809_v16 }
 0x3d9   : > { %1870 = vrot.lane.b32.xlu0 %v2720_v27, %s2625_s14 }
 0x3dd   : > { %976 = vrot.lane.b32.xlu0 %v2799_v10, %s2620_s9 }
 0x3e1   : > { %1200 = vrot.lane.b32.xlu0 %v2799_v10, %s2623_s12 }
 0x3e5   : > { %1424 = vrot.lane.b32.xlu0 %v2799_v10, %s2622_s11 }
 0x3e9   : > { %1648 = vrot.lane.b32.xlu0 %v2799_v10, %s2624_s13 }
 0x3eb   : > { %v523_v45 = vpop.xlane.xlu1 %522 }
 0x3ec   : > { %2565 = vrcp.f32 %v523_v45 }
 0x3ed   : > { %1872 = vrot.lane.b32.xlu0 %v2799_v10, %s2625_s14 }
 0x3f1   : > { %2096 = vrot.lane.b32.xlu0 %v2799_v10, %s2626_s15 }
 0x3f2   : > { %v744_v47 = vpop.xlane.xlu0 %743 }
 0x3f3   : > { %2567 = vrcp.f32 %v744_v47 }
 0x3f6   : > { %v2566_v49 = vpop.eup %2565  ;;  %v741_v50 = vpop.xlane.xlu1 %740 }
 0x3f7   : > { %2569 = vrcp.f32 %v741_v50  ;;  %v529_v51 = vmul.f32 %v2566_v49, %v2819_v26 }
 0x3f9   : > { %v2472_v54 = vpack.c.bf16 %v530_v53, %v529_v51 }
 0x3fa   : > { %v969_v55 = vpop.xlane.xlu0 %968 }
 0x3fb   : > { %2473 = vmatpush3.bf16.msra.mxu0 %v2472_v54  ;;  %2571 = vrcp.f32 %v969_v55 }
 0x3fc   : > { %2474 = vmatprep.subr.bf16.mxu0 %v2627_v6 }
 0x3fd   : > { %v2568_v59 = vpop.eup %2567 }
 0x3fe   : > { %v966_v58 = vpop.xlane.xlu1 %965  ;;  %2385 = vmatmul.mubr.msk.f32.vlgmr.msra.gmra.mrb[2].mxu0 %vm508_vm1, %v2720_v27  ;;  %v748_v16 = vmul.f32 %v2568_v59, %v2825_v35 }
 0x3ff   : > { %2573 = vrcp.f32 %v966_v58  ;;  %2396 = vmatprep.mubr.msk.f32.mxu0 %vm2628_vm2, %v2629_v4 }
 0x401   : > { %v2570_v60 = vpop.eup %2569 }
 0x402   : > { %v1193_v61 = vpop.xlane.xlu1 %1192  ;;  %v747_v26 = vmul.f32 %v2570_v60, %v2831_v42 }
 0x403   : > { %2575 = vrcp.f32 %v1193_v61  ;;  %v1190_v62 = vpop.xlane.xlu0 %1189 }
 0x404   : > { %2577 = vrcp.f32 %v1190_v62  ;;  %v2475_v1 = vpack.c.bf16 %v748_v16, %v747_v26 }
 0x405   : > { %v2572_v2 = vpop.eup %2571 }
 0x406   : > { %2476 = vmatpush3.bf16.msra.mxu0 %v2475_v1  ;;  %v973_v13 = vmul.f32 %v2572_v2, %v2835_v46 }
 0x407   : > { %2477 = vmatprep.subr.bf16.mxu0 %v2627_v6 }
 0x409   : > { %v2574_v27 = vpop.eup %2573  ;;  %2397 = vmatmul.mubr.msk.f32.vlgmr.msra.gmra.mrb[4].mxu0 %vm508_vm1, %v2803_v11 }
 0x40a   : > { %v1417_v5 = vpop.xlane.xlu1 %1416  ;;  %v972_v63 = vmul.f32 %v2574_v27, %v2841_v52  ;;  %2408 = vmatprep.mubr.msk.f32.mxu0 %vm2628_vm2, %v2629_v4 }
 0x40b   : > { %2579 = vrcp.f32 %v1417_v5  ;;  %v1414_v35 = vpop.xlane.xlu0 %1413 }
 0x40c   : > { %2581 = vrcp.f32 %v1414_v35  ;;  %v2478_v42 = vpack.c.bf16 %v973_v13, %v972_v63 }
 0x40d   : > { %v2576_v14 = vpop.eup %2575 }
 0x40e   : > { %v2578_v0 = vpop.eup %2577  ;;  %2479 = vmatpush3.bf16.msra.mxu0 %v2478_v42  ;;  %v1197_v15 = vmul.f32 %v2576_v14, %v2845_v56 }
 0x40f   : > { %2480 = vmatprep.subr.bf16.mxu0 %v2627_v6  ;;  %v1196_v11 = vmul.f32 %v2578_v0, %v2847_v57 }
 0x411   : > { %2409 = vmatmul.mubr.msk.f32.vlgmr.msra.gmra.mrb[6].mxu0 %vm508_vm1, %v975_v43  ;;  %v2481_v52 = vpack.c.bf16 %v1197_v15, %v1196_v11 }
 0x412   : > { %v1641_v46 = vpop.xlane.xlu1 %1640  ;;  %2420 = vmatprep.mubr.msk.f32.mxu0 %vm2628_vm2, %v2629_v4 }
 0x413   : > { %2583 = vrcp.f32 %v1641_v46  ;;  %v1638_v17 = vpop.xlane.xlu0 %1637  ;;  %2482 = vmatpush3.bf16.msra.mxu0 %v2481_v52 }
 0x414   : > { %2585 = vrcp.f32 %v1638_v17  ;;  %2483 = vmatprep.subr.bf16.mxu0 %v2627_v6 }
 0x415   : > { %v2580_v18 = vpop.eup %2579 }
 0x416   : > { %v2582_v19 = vpop.eup %2581  ;;  %2421 = vmatmul.mubr.msk.f32.vlgmr.msra.gmra.mrb[8].mxu0 %vm508_vm1, %v2891_v33  ;;  %v1421_v56 = vmul.f32 %v2580_v18, %v2856_v8 }
 0x417   : > { %v1420_v57 = vmul.f32 %v2582_v19, %v2858_v12  ;;  %2432 = vmatprep.mubr.msk.f32.mxu0 %vm2628_vm2, %v2629_v4 }
 0x419   : > { %v2484_v22 = vpack.c.bf16 %v1421_v56, %v1420_v57 }
 0x41a   : > { %v1865_v3 = vpop.xlane.xlu1 %1864 }
 0x41b   : > { %2587 = vrcp.f32 %v1865_v3  ;;  %v1862_v23 = vpop.xlane.xlu0 %1861  ;;  %2485 = vmatpush3.bf16.msra.mxu0 %v2484_v22 }
 0x41c   : > { %2589 = vrcp.f32 %v1862_v23  ;;  %2486 = vmatprep.subr.bf16.mxu0 %v2627_v6 }
 0x41d   : > { %v2584_v24 = vpop.eup %2583 }
 0x41e   : > { %v2586_v25 = vpop.eup %2585  ;;  %2433 = vmatmul.mubr.msk.f32.vlgmr.msra.gmra.mrb[10].mxu0 %vm508_vm1, %v2904_v41  ;;  %v1645_v8 = vmul.f32 %v2584_v24, %v2866_v20 }
 0x41f   : > { %v1644_v12 = vmul.f32 %v2586_v25, %v2868_v21  ;;  %2444 = vmatprep.mubr.msk.f32.mxu0 %vm2628_vm2, %v2629_v4 }
 0x421   : > { %v2487_v30 = vpack.c.bf16 %v1645_v8, %v1644_v12 }
 0x422   : > { %v2089_v21 = vpop.xlane.xlu1 %2088 }
 0x423   : > { %2488 = vmatpush3.bf16.msra.mxu0 %v2487_v30  ;;  %2591 = vrcp.f32 %v2089_v21 }
 0x424   : > { %2489 = vmatprep.subr.bf16.mxu0 %v2627_v6 }
 0x425   : > { %v2588_v7 = vpop.eup %2587 }
 0x426   : > { %v2590_v32 = vpop.eup %2589  ;;  %2445 = vmatmul.mubr.msk.f32.vlgmr.msra.gmra.mrb[12].mxu0 %vm508_vm1, %v2908_v9  ;;  %v1869_v33 = vmul.f32 %v2588_v7, %v2877_v28 }
 0x427   : > { %v1868_v34 = vmul.f32 %v2590_v32, %v2879_v29  ;;  %2456 = vmatprep.mubr.msk.f32.mxu0 %vm2628_vm2, %v2629_v4 }
 0x429   : > { %v2490_v20 = vpack.c.bf16 %v1869_v33, %v1868_v34 }
 0x42b   : > { %2491 = vmatpush3.bf16.msra.mxu0 %v2490_v20 }
 0x42c   : > { %2492 = vmatprep.subr.bf16.mxu0 %v2627_v6  ;;  %v2095_v6 = vpop.permute.xlu1 %2094 }
 0x42d   : > { %v2592_v28 = vpop.eup %2591 }
 0x42e   : > { %v2093_v41 = vmul.f32 %v2592_v28, %v2885_v31 }
 0x450   : > { %v2086_v36 = vpop.xlane.xlu0 %2085 }
 0x451   : > { %2593 = vrcp.f32 %v2086_v36 }
 0x454   : > { %v1871_v37 = vpop.permute.xlu0 %1870 }
 0x455   : > { %2457 = vmatmul.mubr.msk.f32.vlgmr.msra.gmra.mrb[14].mxu0 %vm508_vm1, %v1871_v37 }
 0x456   : > { %2468 = vmatprep.mubr.msk.f32.mxu0 %vm2628_vm2, %v2629_v4 }
 0x458   : > { %v977_v47 = vpop.permute.xlu0 %976 }
 0x45b   : > { %v2594_v29 = vpop.eup %2593 }
 0x45c   : > { %v2092_v39 = vmul.f32 %v2594_v29, %v2894_v38  ;;  %v1201_v51 = vpop.permute.xlu0 %1200 }
 0x45e   : > { %v2493_v43 = vpack.c.bf16 %v2093_v41, %v2092_v39 }
 0x460   : > { %2494 = vmatpush3.bf16.msra.mxu0 %v2493_v43 }
 0x463   : > { %2469 = vmatmul.mubr.msk.f32.vlgmr.msra.gmra.mrb[16].mxu0 %vm508_vm1, %v2095_v6 }
 0x4d1   : > { %v600_v9 = vpop.f32.mrb[2].mxu0 }
 0x4d2   : > { %v601_v4 = vadd.f32 %v600_v9, %v2799_v10  ;;  %v2386_v44 = vpop.f32.mrb[3].mxu0  ;;  %v1425_v10 = vpop.permute.xlu0 %1424 }
 0x4d4   : > { %605 = vst.msk [vmem:[%s2973_s28] sm:$0xf] %vm604_vm3, %v601_v4 }
 0x4dc   : > { %v823_v38 = vpop.f32.mrb[4].mxu0 }
 0x4dd   : > { %v824_v31 = vadd.f32 %v823_v38, %v2900_v40  ;;  %v2398_v45 = vpop.f32.mrb[5].mxu0  ;;  %v1649_v40 = vpop.permute.xlu0 %1648 }
 0x4df   : > { %828 = vrot.lane.b32.xlu1 %v824_v31, %s2626_s15 }
 0x4e1   : > { %v1873_v62 = vpop.permute.xlu0 %1872 }
 0x4e4   : > { %v1047_v48 = vpop.f32.mrb[6].mxu0 }
 0x4e5   : > { %v1048_v49 = vadd.f32 %v1047_v48, %v977_v47  ;;  %v2410_v50 = vpop.f32.mrb[7].mxu0  ;;  %v2097_v5 = vpop.permute.xlu0 %2096 }
 0x4e7   : > { %1052 = vrot.lane.b32.xlu1 %v1048_v49, %s2625_s14 }
 0x4e9   : > { %v1271_v53 = vpop.f32.mrb[8].mxu0 }
 0x4ea   : > { %v1272_v54 = vadd.f32 %v1271_v53, %v1201_v51  ;;  %v2422_v55 = vpop.f32.mrb[9].mxu0 }
 0x4ec   : > { %1276 = vrot.lane.b32.xlu1 %v1272_v54, %s2624_s13 }
 0x4f1   : > { %v1495_v58 = vpop.f32.mrb[10].mxu0 }
 0x4f2   : > { %v1496_v59 = vadd.f32 %v1495_v58, %v1425_v10  ;;  %v2434_v60 = vpop.f32.mrb[11].mxu0 }
 0x4f4   : > { %1500 = vrot.lane.b32.xlu1 %v1496_v59, %s2622_s11 }
 0x4f9   : > { %v1719_v61 = vpop.f32.mrb[12].mxu0 }
 0x4fa   : > { %v1720_v26 = vadd.f32 %v1719_v61, %v1649_v40  ;;  %v2446_v16 = vpop.f32.mrb[13].mxu0 }
 0x4fc   : > { %1724 = vrot.lane.b32.xlu1 %v1720_v26, %s2623_s12 }
 0x528   : > { %v1943_v1 = vpop.f32.mrb[14].mxu0 }
 0x529   : > { %v1944_v2 = vadd.f32 %v1943_v1, %v1873_v62  ;;  %v2458_v27 = vpop.f32.mrb[15].mxu0 }
 0x52b   : > { %1948 = vrot.lane.b32.xlu1 %v1944_v2, %s2620_s9 }
 0x536   : > { %v2167_v63 = vpop.f32.mrb[16].mxu0 }
 0x537   : > { %v2168_v13 = vadd.f32 %v2167_v63, %v2097_v5  ;;  %v2470_v35 = vpop.f32.mrb[17].mxu0 }
 0x539   : > { %2172 = vrot.lane.b32.xlu1 %v2168_v13, %s2621_s10 }
 0x551   : > { %v829_v42 = vpop.permute.xlu1 %828 }
 0x552   : > { %832 = vst.msk [vmem:[%s2973_s28] sm:$0xf] %vm831_vm4, %v829_v42 }
 0x559   : > { %v1053_v14 = vpop.permute.xlu1 %1052 }
 0x55a   : > { %1056 = vst.msk [vmem:[%s2973_s28] sm:$0xf] %vm1055_vm5, %v1053_v14 }
 0x55e   : > { %v1277_v0 = vpop.permute.xlu1 %1276 }
 0x55f   : > { %1280 = vst.msk [vmem:[%s2973_s28] sm:$0xf] %vm1279_vm6, %v1277_v0 }
 0x566   : > { %v1501_v15 = vpop.permute.xlu1 %1500 }
 0x567   : > { %1504 = vst.msk [vmem:[%s2973_s28] sm:$0xf] %vm1503_vm7, %v1501_v15 }
 0x56e   : > { %v1725_v11 = vpop.permute.xlu1 %1724 }
 0x56f   : > { %1728 = vst.msk [vmem:[%s2973_s28] sm:$0xf] %vm1727_vm8, %v1725_v11 }
 0x59d   : > { %v1949_v52 = vpop.permute.xlu1 %1948 }
 0x59e   : > { %1952 = vst.msk [vmem:[%s2973_s28] sm:$0xf] %vm1951_vm9, %v1949_v52 }
 0x5ab   : > { %v2173_v46 = vpop.permute.xlu1 %2172 }
 0x5ac   : > { %2176 = vst.msk [vmem:[%s2973_s28] sm:$0xf] %vm2175_vm10, %v2173_v46 }
 0x5ad PF: > { %s15_s20 = sadd.s32 1, %s2617_s20   ;;  %s3007_s18 = smov %s2613_s19 }
 0x5ae   : > { %p12_p5 = scmp.ge.s32.totalorder %s15_s20, 4   ;;  %s3008_s19 = smov %s3010_s21 }
 0x5b0   :  { %14 = sbr.rel (!%p12_p5) target bundleno = 2 (0x2), region = 76 }

</bundles_post_ra>
